<compile_context>
chip_gen: v7x
topology: tpu7x:2x2x1
jax: 0.10.0
libtpu: 0.0.40
codegen_flags: <defaults>
</compile_context>

<pallas_src>
import jax
import jax.numpy as jnp
from jax import lax
from jax.experimental import pallas as pl
from jax.experimental.pallas import tpu as pltpu

EPS = 1e-5    # BatchNorm2d default eps
LPAD = 8      # tile-aligned (multiple-of-8 sublanes) left halo in the scratch


def _round_up(x, m):
    return ((x + m - 1) // m) * m


# ------------------------------- fused kernel --------------------------------

def _fused_bottleneck_kernel(x_ref, w1_ref, w2_ref, w3_ref,
                             f1w_ref, f1b_ref, f2w_ref, f2b_ref,
                             s1_ref, b1_ref, s2_ref, b2_ref, s3_ref, b3_ref,
                             o_ref, o1_scr, o2_scr):
    _, H, W, Cin = x_ref.shape
    width = o1_scr.shape[2]
    outc = o_ref.shape[3]
    f32, bf16 = jnp.float32, jnp.bfloat16

    # Zero the padded scratches: the halo rows/cols must be exactly zero
    # (zero padding of the 3x3 convs, and it makes the GAP over the full slab
    # equal the GAP over the valid interior).  At these sizes the full clear
    # is trivial; at production scale only the halo would be cleared.
    o1_scr[...] = jnp.zeros_like(o1_scr)
    o2_scr[...] = jnp.zeros_like(o2_scr)

    # ---- conv1 (1x1) + bn1 + relu: one (H*W, Cin) x (Cin, width) MXU matmul.
    xv = x_ref[0].reshape(H * W, Cin)
    o1 = jnp.dot(xv.astype(bf16), w1_ref[...], preferred_element_type=f32)
    o1 = jnp.maximum(o1 * s1_ref[...] + b1_ref[...], 0.0)
    # Interior of the zero-padded scratch: rows 1..H, cols LPAD..LPAD+W-1
    # (column offset LPAD=8 keeps this store sublane-aligned).
    o1_scr[pl.ds(1, H), pl.ds(LPAD, W), :] = o1.reshape(H, W, width)

    def conv3x3(scr_ref, w_ref, cout):
        # 3x3 conv (pad=1) as 9 channel matmuls on the MXU.  The kx (column)
        # shift is hoisted out of the ky loop: 3 column-shifted loads of the
        # whole padded slab (only 2 of them sublane-unaligned), then every ky
        # tap is a free slice along the untiled H axis plus a free reshape
        # (W is a multiple of 8).
        # NOTE: the two unaligned loads could additionally be moved onto the
        # XLU with a pltpu.roll sublane rotate of the aligned slab.
        cin = scr_ref.shape[2]
        acc = jnp.zeros((H * W, cout), f32)
        for kx in range(3):
            sh = scr_ref[:, pl.ds(LPAD + kx - 1, W), :].astype(bf16)  # (H+2, W, cin)
            for ky in range(3):
                blk = sh[ky:ky + H].reshape(H * W, cin)
                acc = acc + jnp.dot(blk, w_ref[3 * ky + kx],
                                    preferred_element_type=f32)
        return acc

    # ---- conv2 (3x3, pad=1) + bn2 + relu; o1 never leaves VMEM.
    acc2 = conv3x3(o1_scr, w2_ref, width)
    o2 = jnp.maximum(acc2 * s2_ref[...] + b2_ref[...], 0.0)
    o2_scr[pl.ds(1, H), pl.ds(LPAD, W), :] = o2.reshape(H, W, width)

    # ---- conv3 = AdaptiveConv: conv3x3 * SE gate, then bn3 + residual + relu.
    acc3 = conv3x3(o2_scr, w3_ref, outc)

    # SE gate from the global average pool of o2 (aligned interior load).
    o2_valid = o2_scr[pl.ds(1, H), pl.ds(LPAD, W), :]
    gap = jnp.sum(o2_valid, axis=(0, 1), keepdims=True).reshape(1, width)
    gap = gap * (1.0 / (H * W))
    a = jnp.maximum(jnp.dot(gap, f1w_ref[...], preferred_element_type=f32)
                    + f1b_ref[...], 0.0)
    gate = jax.nn.sigmoid(jnp.dot(a, f2w_ref[...], preferred_element_type=f32)
                          + f2b_ref[...])                      # (1, outc)

    y = acc3 * gate                                            # SE-style gating
    y = y * s3_ref[...] + b3_ref[...]                          # folded bn3
    y = y + x_ref[0].reshape(H * W, outc)                      # residual (downsample=None)
    o_ref[0] = jnp.maximum(y, 0.0).reshape(H, W, outc)


# --------------------------------- wrapper ------------------------------------

def _fold_bn(bn):
    gamma, beta, mean, var = bn
    scale = gamma / jnp.sqrt(var + EPS)
    return scale, beta - mean * scale


def bottleneck_forward(x_nchw, p):
    """DataSetAwareAdaptiveBottleneck forward (stride=1, downsample=None, BN eval)."""
    x = jnp.transpose(x_nchw, (0, 2, 3, 1)).astype(jnp.float32)   # NCHW -> NHWC
    N, H, W, Cin = x.shape
    width = p['w1'].shape[1]
    outc = p['w3'].shape[3]
    assert Cin == outc, "residual add requires inplanes == planes*4 (downsample=None)"

    Hp = H + 2                                  # 1-row halo top/bottom
    Wa = _round_up(LPAD + W + 1, 8)             # aligned left halo + right halo

    s1, b1 = _fold_bn(p['bn1'])
    s2, b2 = _fold_bn(p['bn2'])
    s3, b3 = _fold_bn(p['bn3'])

    # bf16 weights for the MXU matmuls (accumulation stays f32 in-kernel).
    w1 = p['w1'].astype(jnp.bfloat16)
    w2 = p['w2'].reshape(9, width, width).astype(jnp.bfloat16)
    w3 = p['w3'].reshape(9, width, outc).astype(jnp.bfloat16)

    def _rep(shape):  # replicated (whole-array) operand
        return pl.BlockSpec(shape, lambda n: (0,) * len(shape))

    out = pl.pallas_call(
        _fused_bottleneck_kernel,
        out_shape=jax.ShapeDtypeStruct((N, H, W, outc), jnp.float32),
        grid=(N,),
        in_specs=[
            pl.BlockSpec((1, H, W, Cin), lambda n: (n, 0, 0, 0)),
            _rep((Cin, width)),
            _rep((9, width, width)),
            _rep((9, width, outc)),
            _rep((width, outc)),
            _rep((1, outc)),
            _rep((outc, outc)),
            _rep((1, outc)),
            _rep((1, width)), _rep((1, width)),
            _rep((1, width)), _rep((1, width)),
            _rep((1, outc)), _rep((1, outc)),
        ],
        out_specs=pl.BlockSpec((1, H, W, outc), lambda n: (n, 0, 0, 0)),
        scratch_shapes=[
            pltpu.VMEM((Hp, Wa, width), jnp.float32),   # o1 (zero-padded halo)
            pltpu.VMEM((Hp, Wa, width), jnp.float32),   # o2 (zero-padded halo)
        ],
        compiler_params=pltpu.CompilerParams(
            dimension_semantics=("parallel",)),
    )(x, w1, w2, w3,
      p['fc1w'], p['fc1b'].reshape(1, outc),
      p['fc2w'], p['fc2b'].reshape(1, outc),
      s1.reshape(1, width), b1.reshape(1, width),
      s2.reshape(1, width), b2.reshape(1, width),
      s3.reshape(1, outc), b3.reshape(1, outc))
    return jnp.transpose(out, (0, 3, 1, 2))   # NHWC -> NCHW


# --------------------------- pure-JAX reference -------------------------------

def reference_forward(x_nchw, p):
    x = jnp.transpose(x_nchw, (0, 2, 3, 1)).astype(jnp.float32)

    def bn(y, t):
        g, be, m, v = t
        return (y - m) * (g / jnp.sqrt(v + EPS)) + be

    o = jnp.einsum('nhwc,cd->nhwd', x, p['w1'])
    o = jax.nn.relu(bn(o, p['bn1']))
    o = lax.conv_general_dilated(o, p['w2'], (1, 1), 'SAME',
                                 dimension_numbers=('NHWC', 'HWIO', 'NHWC'))
    o = jax.nn.relu(bn(o, p['bn2']))
    c = lax.conv_general_dilated(o, p['w3'], (1, 1), 'SAME',
                                 dimension_numbers=('NHWC', 'HWIO', 'NHWC'))
    gap = jnp.mean(o, axis=(1, 2))
    a = jax.nn.relu(gap @ p['fc1w'] + p['fc1b'])
    g = jax.nn.sigmoid(a @ p['fc2w'] + p['fc2b'])
    y = bn(c * g[:, None, None, :], p['bn3'])
    y = jax.nn.relu(y + x)
    return jnp.transpose(y, (0, 3, 1, 2))


# ---------------------------------- main --------------------------------------

def _mk_bn(key, c):
    k1, k2, k3, k4 = jax.random.split(key, 4)
    gamma = 1.0 + 0.1 * jax.random.normal(k1, (c,), jnp.float32)
    beta = 0.1 * jax.random.normal(k2, (c,), jnp.float32)
    mean = 0.1 * jax.random.normal(k3, (c,), jnp.float32)
    var = 0.7 + 0.3 * jax.random.uniform(k4, (c,), jnp.float32)
    return (gamma, beta, mean, var)


if __name__ == "__main__":
    # Small shapes consistent with the module: stride=1, inplanes == planes*4
    # so downsample is None and the residual add is valid.  W is a multiple of
    # 8 so the in-kernel reshapes stay layout-free.
    N, inplanes, H, W = 2, 64, 8, 8
    planes, base_width, groups = 16, 64, 1
    width = int(planes * (base_width / 64.0)) * groups   # 16
    outc = planes * 4                                    # 64 == inplanes

    key = jax.random.PRNGKey(0)
    ks = jax.random.split(key, 12)
    params = {
        'w1': jax.random.normal(ks[0], (inplanes, width), jnp.float32) / jnp.sqrt(1.0 * inplanes),
        'w2': jax.random.normal(ks[1], (3, 3, width, width), jnp.float32) / jnp.sqrt(9.0 * width),
        'w3': jax.random.normal(ks[2], (3, 3, width, outc), jnp.float32) / jnp.sqrt(9.0 * width),
        'fc1w': jax.random.normal(ks[3], (width, outc), jnp.float32) / jnp.sqrt(1.0 * width),
        'fc1b': 0.1 * jax.random.normal(ks[4], (outc,), jnp.float32),
        'fc2w': jax.random.normal(ks[5], (outc, outc), jnp.float32) / jnp.sqrt(1.0 * outc),
        'fc2b': 0.1 * jax.random.normal(ks[6], (outc,), jnp.float32),
        'bn1': _mk_bn(ks[7], width),
        'bn2': _mk_bn(ks[8], width),
        'bn3': _mk_bn(ks[9], outc),
    }
    x = jax.random.normal(ks[10], (N, inplanes, H, W), jnp.float32)

    out = jax.jit(bottleneck_forward)(x, params)
    out = jax.block_until_ready(out)

    ref = reference_forward(x, params)
    assert out.shape == (N, outc, H, W), out.shape
    assert bool(jnp.all(jnp.isfinite(out)))
    err = float(jnp.max(jnp.abs(out - ref)))
    # bf16 MXU matmuls (f32 accumulation) vs. an f32 reference -> slightly
    # looser tolerance than a pure-f32 comparison.
    assert bool(jnp.allclose(out, ref, atol=2e-2, rtol=2e-2)), err
    print("KERNEL_OK")
</pallas_src>

<mosaic_0001>
module attributes {stable_mosaic.version = 11 : i64} {
  func.func @_fused_bottleneck_kernel(%arg0: i32, %arg1: memref<1x8x8x64xf32, #tpu.memory_space<vmem>>, %arg2: memref<64x16xbf16, #tpu.memory_space<vmem>>, %arg3: memref<9x16x16xbf16, #tpu.memory_space<vmem>>, %arg4: memref<9x16x64xbf16, #tpu.memory_space<vmem>>, %arg5: memref<16x64xf32, #tpu.memory_space<vmem>>, %arg6: memref<1x64xf32, #tpu.memory_space<vmem>>, %arg7: memref<64x64xf32, #tpu.memory_space<vmem>>, %arg8: memref<1x64xf32, #tpu.memory_space<vmem>>, %arg9: memref<1x16xf32, #tpu.memory_space<vmem>>, %arg10: memref<1x16xf32, #tpu.memory_space<vmem>>, %arg11: memref<1x16xf32, #tpu.memory_space<vmem>>, %arg12: memref<1x16xf32, #tpu.memory_space<vmem>>, %arg13: memref<1x64xf32, #tpu.memory_space<vmem>>, %arg14: memref<1x64xf32, #tpu.memory_space<vmem>>, %arg15: memref<1x8x8x64xf32, #tpu.memory_space<vmem>>, %arg16: memref<10x24x16xf32, #tpu.memory_space<vmem>>, %arg17: memref<10x24x16xf32, #tpu.memory_space<vmem>>) attributes {dimension_semantics = [#tpu.dimension_semantics<parallel>], iteration_bounds = array<i64: 2>, scalar_prefetch = 0 : i64, scratch_operands = 2 : i64, tpu.core_type = #tpu.core_type<tc>, window_params = [{transform_indices = @transform_0, window_bounds = array<i64: 1, 8, 8, 64>}, {pipeline_mode = #tpu.pipeline_mode<synchronous>, transform_indices = @transform_1, window_bounds = array<i64: 64, 16>}, {pipeline_mode = #tpu.pipeline_mode<synchronous>, transform_indices = @transform_2, window_bounds = array<i64: 9, 16, 16>}, {pipeline_mode = #tpu.pipeline_mode<synchronous>, transform_indices = @transform_3, window_bounds = array<i64: 9, 16, 64>}, {pipeline_mode = #tpu.pipeline_mode<synchronous>, transform_indices = @transform_4, window_bounds = array<i64: 16, 64>}, {pipeline_mode = #tpu.pipeline_mode<synchronous>, transform_indices = @transform_5, window_bounds = array<i64: 1, 64>}, {pipeline_mode = #tpu.pipeline_mode<synchronous>, transform_indices = @transform_6, window_bounds = array<i64: 64, 64>}, {pipeline_mode = #tpu.pipeline_mode<synchronous>, transform_indices = @transform_7, window_bounds = array<i64: 1, 64>}, {pipeline_mode = #tpu.pipeline_mode<synchronous>, transform_indices = @transform_8, window_bounds = array<i64: 1, 16>}, {pipeline_mode = #tpu.pipeline_mode<synchronous>, transform_indices = @transform_9, window_bounds = array<i64: 1, 16>}, {pipeline_mode = #tpu.pipeline_mode<synchronous>, transform_indices = @transform_10, window_bounds = array<i64: 1, 16>}, {pipeline_mode = #tpu.pipeline_mode<synchronous>, transform_indices = @transform_11, window_bounds = array<i64: 1, 16>}, {pipeline_mode = #tpu.pipeline_mode<synchronous>, transform_indices = @transform_12, window_bounds = array<i64: 1, 64>}, {pipeline_mode = #tpu.pipeline_mode<synchronous>, transform_indices = @transform_13, window_bounds = array<i64: 1, 64>}, {transform_indices = @transform_14, window_bounds = array<i64: 1, 8, 8, 64>}]} {
    %cst = arith.constant 0.000000e+00 : f32
    %0 = vector.broadcast %cst : f32 to vector<10x24x16xf32>
    %c0 = arith.constant 0 : index
    %c0_0 = arith.constant 0 : index
    %c0_1 = arith.constant 0 : index
    %1 = vector.load %arg16[%c0, %c0_0, %c0_1] : memref<10x24x16xf32, #tpu.memory_space<vmem>>, vector<10x24x16xf32>
    tpu.vector_store %arg16[%c0, %c0_0, %c0_1], %0 {strides = array<i32>} : memref<10x24x16xf32, #tpu.memory_space<vmem>>, vector<10x24x16xf32>,
    %cst_2 = arith.constant 0.000000e+00 : f32
    %2 = vector.broadcast %cst_2 : f32 to vector<10x24x16xf32>
    %c0_3 = arith.constant 0 : index
    %c0_4 = arith.constant 0 : index
    %c0_5 = arith.constant 0 : index
    %3 = vector.load %arg17[%c0_3, %c0_4, %c0_5] : memref<10x24x16xf32, #tpu.memory_space<vmem>>, vector<10x24x16xf32>
    tpu.vector_store %arg17[%c0_3, %c0_4, %c0_5], %2 {strides = array<i32>} : memref<10x24x16xf32, #tpu.memory_space<vmem>>, vector<10x24x16xf32>,
    %c0_6 = arith.constant 0 : index
    %c0_7 = arith.constant 0 : index
    %c0_8 = arith.constant 0 : index
    %c0_9 = arith.constant 0 : index
    %4 = vector.load %arg1[%c0_6, %c0_7, %c0_8, %c0_9] : memref<1x8x8x64xf32, #tpu.memory_space<vmem>>, vector<1x8x8x64xf32>
    %5 = vector.shape_cast %4 : vector<1x8x8x64xf32> to vector<8x8x64xf32>
    %6 = vector.shape_cast %5 : vector<8x8x64xf32> to vector<64x64xf32>
    %7 = arith.truncf %6 : vector<64x64xf32> to vector<64x64xbf16>
    %c0_10 = arith.constant 0 : index
    %c0_11 = arith.constant 0 : index
    %8 = vector.load %arg2[%c0_10, %c0_11] : memref<64x16xbf16, #tpu.memory_space<vmem>>, vector<64x16xbf16>
    %cst_12 = arith.constant dense<0.000000e+00> : vector<64x16xf32>
    %9 = tpu.matmul %7, %8, %cst_12 {dimension_numbers = #tpu.dot_dimension_numbers<[1], [0], [0], [1], [0, 0, 1, 1], [], []>} : vector<64x64xbf16>, vector<64x16xbf16>, vector<64x16xf32> -> vector<64x16xf32>
    %c0_13 = arith.constant 0 : index
    %c0_14 = arith.constant 0 : index
    %10 = vector.load %arg9[%c0_13, %c0_14] : memref<1x16xf32, #tpu.memory_space<vmem>>, vector<1x16xf32>
    %11 = vector.broadcast %10 : vector<1x16xf32> to vector<64x16xf32>
    %12 = arith.mulf %9, %11 : vector<64x16xf32>
    %c0_15 = arith.constant 0 : index
    %c0_16 = arith.constant 0 : index
    %13 = vector.load %arg10[%c0_15, %c0_16] : memref<1x16xf32, #tpu.memory_space<vmem>>, vector<1x16xf32>
    %14 = vector.broadcast %13 : vector<1x16xf32> to vector<64x16xf32>
    %15 = arith.addf %12, %14 : vector<64x16xf32>
    %cst_17 = arith.constant 0.000000e+00 : f32
    %16 = vector.broadcast %cst_17 : f32 to vector<64x16xf32>
    %17 = arith.maximumf %15, %16 : vector<64x16xf32>
    %18 = vector.shape_cast %17 : vector<64x16xf32> to vector<8x8x16xf32>
    %c1 = arith.constant 1 : index
    %c8 = arith.constant 8 : index
    %c0_18 = arith.constant 0 : index
    %19 = vector.load %arg16[%c1, %c8, %c0_18] : memref<10x24x16xf32, #tpu.memory_space<vmem>>, vector<8x8x16xf32>
    tpu.vector_store %arg16[%c1, %c8, %c0_18], %18 {strides = array<i32>} : memref<10x24x16xf32, #tpu.memory_space<vmem>>, vector<8x8x16xf32>,
    %cst_19 = arith.constant 0.000000e+00 : f32
    %20 = vector.broadcast %cst_19 : f32 to vector<64x16xf32>
    %c0_20 = arith.constant 0 : index
    %c7 = arith.constant 7 : index
    %c0_21 = arith.constant 0 : index
    %21 = vector.load %arg16[%c0_20, %c7, %c0_21] : memref<10x24x16xf32, #tpu.memory_space<vmem>>, vector<10x8x16xf32>
    %22 = arith.truncf %21 : vector<10x8x16xf32> to vector<10x8x16xbf16>
    %23 = vector.extract_strided_slice %22 {offsets = [0, 0, 0], sizes = [8, 8, 16], strides = [1, 1, 1]} : vector<10x8x16xbf16> to vector<8x8x16xbf16>
    %24 = vector.shape_cast %23 : vector<8x8x16xbf16> to vector<64x16xbf16>
    %c0_22 = arith.constant 0 : index
    %c0_23 = arith.constant 0 : index
    %c0_24 = arith.constant 0 : index
    %25 = vector.load %arg3[%c0_22, %c0_23, %c0_24] : memref<9x16x16xbf16, #tpu.memory_space<vmem>>, vector<1x16x16xbf16>
    %26 = vector.shape_cast %25 : vector<1x16x16xbf16> to vector<16x16xbf16>
    %cst_25 = arith.constant dense<0.000000e+00> : vector<64x16xf32>
    %27 = tpu.matmul %24, %26, %cst_25 {dimension_numbers = #tpu.dot_dimension_numbers<[1], [0], [0], [1], [0, 0, 1, 1], [], []>} : vector<64x16xbf16>, vector<16x16xbf16>, vector<64x16xf32> -> vector<64x16xf32>
    %28 = arith.addf %20, %27 : vector<64x16xf32>
    %29 = vector.extract_strided_slice %22 {offsets = [1, 0, 0], sizes = [8, 8, 16], strides = [1, 1, 1]} : vector<10x8x16xbf16> to vector<8x8x16xbf16>
    %30 = vector.shape_cast %29 : vector<8x8x16xbf16> to vector<64x16xbf16>
    %c3 = arith.constant 3 : index
    %c0_26 = arith.constant 0 : index
    %c0_27 = arith.constant 0 : index
    %31 = vector.load %arg3[%c3, %c0_26, %c0_27] : memref<9x16x16xbf16, #tpu.memory_space<vmem>>, vector<1x16x16xbf16>
    %32 = vector.shape_cast %31 : vector<1x16x16xbf16> to vector<16x16xbf16>
    %cst_28 = arith.constant dense<0.000000e+00> : vector<64x16xf32>
    %33 = tpu.matmul %30, %32, %cst_28 {dimension_numbers = #tpu.dot_dimension_numbers<[1], [0], [0], [1], [0, 0, 1, 1], [], []>} : vector<64x16xbf16>, vector<16x16xbf16>, vector<64x16xf32> -> vector<64x16xf32>
    %34 = arith.addf %28, %33 : vector<64x16xf32>
    %35 = vector.extract_strided_slice %22 {offsets = [2, 0, 0], sizes = [8, 8, 16], strides = [1, 1, 1]} : vector<10x8x16xbf16> to vector<8x8x16xbf16>
    %36 = vector.shape_cast %35 : vector<8x8x16xbf16> to vector<64x16xbf16>
    %c6 = arith.constant 6 : index
    %c0_29 = arith.constant 0 : index
    %c0_30 = arith.constant 0 : index
    %37 = vector.load %arg3[%c6, %c0_29, %c0_30] : memref<9x16x16xbf16, #tpu.memory_space<vmem>>, vector<1x16x16xbf16>
    %38 = vector.shape_cast %37 : vector<1x16x16xbf16> to vector<16x16xbf16>
    %cst_31 = arith.constant dense<0.000000e+00> : vector<64x16xf32>
    %39 = tpu.matmul %36, %38, %cst_31 {dimension_numbers = #tpu.dot_dimension_numbers<[1], [0], [0], [1], [0, 0, 1, 1], [], []>} : vector<64x16xbf16>, vector<16x16xbf16>, vector<64x16xf32> -> vector<64x16xf32>
    %40 = arith.addf %34, %39 : vector<64x16xf32>
    %c0_32 = arith.constant 0 : index
    %c8_33 = arith.constant 8 : index
    %c0_34 = arith.constant 0 : index
    %41 = vector.load %arg16[%c0_32, %c8_33, %c0_34] : memref<10x24x16xf32, #tpu.memory_space<vmem>>, vector<10x8x16xf32>
    %42 = arith.truncf %41 : vector<10x8x16xf32> to vector<10x8x16xbf16>
    %43 = vector.extract_strided_slice %42 {offsets = [0, 0, 0], sizes = [8, 8, 16], strides = [1, 1, 1]} : vector<10x8x16xbf16> to vector<8x8x16xbf16>
    %44 = vector.shape_cast %43 : vector<8x8x16xbf16> to vector<64x16xbf16>
    %c1_35 = arith.constant 1 : index
    %c0_36 = arith.constant 0 : index
    %c0_37 = arith.constant 0 : index
    %45 = vector.load %arg3[%c1_35, %c0_36, %c0_37] : memref<9x16x16xbf16, #tpu.memory_space<vmem>>, vector<1x16x16xbf16>
    %46 = vector.shape_cast %45 : vector<1x16x16xbf16> to vector<16x16xbf16>
    %cst_38 = arith.constant dense<0.000000e+00> : vector<64x16xf32>
    %47 = tpu.matmul %44, %46, %cst_38 {dimension_numbers = #tpu.dot_dimension_numbers<[1], [0], [0], [1], [0, 0, 1, 1], [], []>} : vector<64x16xbf16>, vector<16x16xbf16>, vector<64x16xf32> -> vector<64x16xf32>
    %48 = arith.addf %40, %47 : vector<64x16xf32>
    %49 = vector.extract_strided_slice %42 {offsets = [1, 0, 0], sizes = [8, 8, 16], strides = [1, 1, 1]} : vector<10x8x16xbf16> to vector<8x8x16xbf16>
    %50 = vector.shape_cast %49 : vector<8x8x16xbf16> to vector<64x16xbf16>
    %c4 = arith.constant 4 : index
    %c0_39 = arith.constant 0 : index
    %c0_40 = arith.constant 0 : index
    %51 = vector.load %arg3[%c4, %c0_39, %c0_40] : memref<9x16x16xbf16, #tpu.memory_space<vmem>>, vector<1x16x16xbf16>
    %52 = vector.shape_cast %51 : vector<1x16x16xbf16> to vector<16x16xbf16>
    %cst_41 = arith.constant dense<0.000000e+00> : vector<64x16xf32>
    %53 = tpu.matmul %50, %52, %cst_41 {dimension_numbers = #tpu.dot_dimension_numbers<[1], [0], [0], [1], [0, 0, 1, 1], [], []>} : vector<64x16xbf16>, vector<16x16xbf16>, vector<64x16xf32> -> vector<64x16xf32>
    %54 = arith.addf %48, %53 : vector<64x16xf32>
    %55 = vector.extract_strided_slice %42 {offsets = [2, 0, 0], sizes = [8, 8, 16], strides = [1, 1, 1]} : vector<10x8x16xbf16> to vector<8x8x16xbf16>
    %56 = vector.shape_cast %55 : vector<8x8x16xbf16> to vector<64x16xbf16>
    %c7_42 = arith.constant 7 : index
    %c0_43 = arith.constant 0 : index
    %c0_44 = arith.constant 0 : index
    %57 = vector.load %arg3[%c7_42, %c0_43, %c0_44] : memref<9x16x16xbf16, #tpu.memory_space<vmem>>, vector<1x16x16xbf16>
    %58 = vector.shape_cast %57 : vector<1x16x16xbf16> to vector<16x16xbf16>
    %cst_45 = arith.constant dense<0.000000e+00> : vector<64x16xf32>
    %59 = tpu.matmul %56, %58, %cst_45 {dimension_numbers = #tpu.dot_dimension_numbers<[1], [0], [0], [1], [0, 0, 1, 1], [], []>} : vector<64x16xbf16>, vector<16x16xbf16>, vector<64x16xf32> -> vector<64x16xf32>
    %60 = arith.addf %54, %59 : vector<64x16xf32>
    %c0_46 = arith.constant 0 : index
    %c9 = arith.constant 9 : index
    %c0_47 = arith.constant 0 : index
    %61 = vector.load %arg16[%c0_46, %c9, %c0_47] : memref<10x24x16xf32, #tpu.memory_space<vmem>>, vector<10x8x16xf32>
    %62 = arith.truncf %61 : vector<10x8x16xf32> to vector<10x8x16xbf16>
    %63 = vector.extract_strided_slice %62 {offsets = [0, 0, 0], sizes = [8, 8, 16], strides = [1, 1, 1]} : vector<10x8x16xbf16> to vector<8x8x16xbf16>
    %64 = vector.shape_cast %63 : vector<8x8x16xbf16> to vector<64x16xbf16>
    %c2 = arith.constant 2 : index
    %c0_48 = arith.constant 0 : index
    %c0_49 = arith.constant 0 : index
    %65 = vector.load %arg3[%c2, %c0_48, %c0_49] : memref<9x16x16xbf16, #tpu.memory_space<vmem>>, vector<1x16x16xbf16>
    %66 = vector.shape_cast %65 : vector<1x16x16xbf16> to vector<16x16xbf16>
    %cst_50 = arith.constant dense<0.000000e+00> : vector<64x16xf32>
    %67 = tpu.matmul %64, %66, %cst_50 {dimension_numbers = #tpu.dot_dimension_numbers<[1], [0], [0], [1], [0, 0, 1, 1], [], []>} : vector<64x16xbf16>, vector<16x16xbf16>, vector<64x16xf32> -> vector<64x16xf32>
    %68 = arith.addf %60, %67 : vector<64x16xf32>
    %69 = vector.extract_strided_slice %62 {offsets = [1, 0, 0], sizes = [8, 8, 16], strides = [1, 1, 1]} : vector<10x8x16xbf16> to vector<8x8x16xbf16>
    %70 = vector.shape_cast %69 : vector<8x8x16xbf16> to vector<64x16xbf16>
    %c5 = arith.constant 5 : index
    %c0_51 = arith.constant 0 : index
    %c0_52 = arith.constant 0 : index
    %71 = vector.load %arg3[%c5, %c0_51, %c0_52] : memref<9x16x16xbf16, #tpu.memory_space<vmem>>, vector<1x16x16xbf16>
    %72 = vector.shape_cast %71 : vector<1x16x16xbf16> to vector<16x16xbf16>
    %cst_53 = arith.constant dense<0.000000e+00> : vector<64x16xf32>
    %73 = tpu.matmul %70, %72, %cst_53 {dimension_numbers = #tpu.dot_dimension_numbers<[1], [0], [0], [1], [0, 0, 1, 1], [], []>} : vector<64x16xbf16>, vector<16x16xbf16>, vector<64x16xf32> -> vector<64x16xf32>
    %74 = arith.addf %68, %73 : vector<64x16xf32>
    %75 = vector.extract_strided_slice %62 {offsets = [2, 0, 0], sizes = [8, 8, 16], strides = [1, 1, 1]} : vector<10x8x16xbf16> to vector<8x8x16xbf16>
    %76 = vector.shape_cast %75 : vector<8x8x16xbf16> to vector<64x16xbf16>
    %c8_54 = arith.constant 8 : index
    %c0_55 = arith.constant 0 : index
    %c0_56 = arith.constant 0 : index
    %77 = vector.load %arg3[%c8_54, %c0_55, %c0_56] : memref<9x16x16xbf16, #tpu.memory_space<vmem>>, vector<1x16x16xbf16>
    %78 = vector.shape_cast %77 : vector<1x16x16xbf16> to vector<16x16xbf16>
    %cst_57 = arith.constant dense<0.000000e+00> : vector<64x16xf32>
    %79 = tpu.matmul %76, %78, %cst_57 {dimension_numbers = #tpu.dot_dimension_numbers<[1], [0], [0], [1], [0, 0, 1, 1], [], []>} : vector<64x16xbf16>, vector<16x16xbf16>, vector<64x16xf32> -> vector<64x16xf32>
    %80 = arith.addf %74, %79 : vector<64x16xf32>
    %c0_58 = arith.constant 0 : index
    %c0_59 = arith.constant 0 : index
    %81 = vector.load %arg11[%c0_58, %c0_59] : memref<1x16xf32, #tpu.memory_space<vmem>>, vector<1x16xf32>
    %82 = vector.broadcast %81 : vector<1x16xf32> to vector<64x16xf32>
    %83 = arith.mulf %80, %82 : vector<64x16xf32>
    %c0_60 = arith.constant 0 : index
    %c0_61 = arith.constant 0 : index
    %84 = vector.load %arg12[%c0_60, %c0_61] : memref<1x16xf32, #tpu.memory_space<vmem>>, vector<1x16xf32>
    %85 = vector.broadcast %84 : vector<1x16xf32> to vector<64x16xf32>
    %86 = arith.addf %83, %85 : vector<64x16xf32>
    %cst_62 = arith.constant 0.000000e+00 : f32
    %87 = vector.broadcast %cst_62 : f32 to vector<64x16xf32>
    %88 = arith.maximumf %86, %87 : vector<64x16xf32>
    %89 = vector.shape_cast %88 : vector<64x16xf32> to vector<8x8x16xf32>
    %c1_63 = arith.constant 1 : index
    %c8_64 = arith.constant 8 : index
    %c0_65 = arith.constant 0 : index
    %90 = vector.load %arg17[%c1_63, %c8_64, %c0_65] : memref<10x24x16xf32, #tpu.memory_space<vmem>>, vector<8x8x16xf32>
    tpu.vector_store %arg17[%c1_63, %c8_64, %c0_65], %89 {strides = array<i32>} : memref<10x24x16xf32, #tpu.memory_space<vmem>>, vector<8x8x16xf32>,
    %cst_66 = arith.constant 0.000000e+00 : f32
    %91 = vector.broadcast %cst_66 : f32 to vector<64x64xf32>
    %c0_67 = arith.constant 0 : index
    %c7_68 = arith.constant 7 : index
    %c0_69 = arith.constant 0 : index
    %92 = vector.load %arg17[%c0_67, %c7_68, %c0_69] : memref<10x24x16xf32, #tpu.memory_space<vmem>>, vector<10x8x16xf32>
    %93 = arith.truncf %92 : vector<10x8x16xf32> to vector<10x8x16xbf16>
    %94 = vector.extract_strided_slice %93 {offsets = [0, 0, 0], sizes = [8, 8, 16], strides = [1, 1, 1]} : vector<10x8x16xbf16> to vector<8x8x16xbf16>
    %95 = vector.shape_cast %94 : vector<8x8x16xbf16> to vector<64x16xbf16>
    %c0_70 = arith.constant 0 : index
    %c0_71 = arith.constant 0 : index
    %c0_72 = arith.constant 0 : index
    %96 = vector.load %arg4[%c0_70, %c0_71, %c0_72] : memref<9x16x64xbf16, #tpu.memory_space<vmem>>, vector<1x16x64xbf16>
    %97 = vector.shape_cast %96 : vector<1x16x64xbf16> to vector<16x64xbf16>
    %cst_73 = arith.constant dense<0.000000e+00> : vector<64x64xf32>
    %98 = tpu.matmul %95, %97, %cst_73 {dimension_numbers = #tpu.dot_dimension_numbers<[1], [0], [0], [1], [0, 0, 1, 1], [], []>} : vector<64x16xbf16>, vector<16x64xbf16>, vector<64x64xf32> -> vector<64x64xf32>
    %99 = arith.addf %91, %98 : vector<64x64xf32>
    %100 = vector.extract_strided_slice %93 {offsets = [1, 0, 0], sizes = [8, 8, 16], strides = [1, 1, 1]} : vector<10x8x16xbf16> to vector<8x8x16xbf16>
    %101 = vector.shape_cast %100 : vector<8x8x16xbf16> to vector<64x16xbf16>
    %c3_74 = arith.constant 3 : index
    %c0_75 = arith.constant 0 : index
    %c0_76 = arith.constant 0 : index
    %102 = vector.load %arg4[%c3_74, %c0_75, %c0_76] : memref<9x16x64xbf16, #tpu.memory_space<vmem>>, vector<1x16x64xbf16>
    %103 = vector.shape_cast %102 : vector<1x16x64xbf16> to vector<16x64xbf16>
    %cst_77 = arith.constant dense<0.000000e+00> : vector<64x64xf32>
    %104 = tpu.matmul %101, %103, %cst_77 {dimension_numbers = #tpu.dot_dimension_numbers<[1], [0], [0], [1], [0, 0, 1, 1], [], []>} : vector<64x16xbf16>, vector<16x64xbf16>, vector<64x64xf32> -> vector<64x64xf32>
    %105 = arith.addf %99, %104 : vector<64x64xf32>
    %106 = vector.extract_strided_slice %93 {offsets = [2, 0, 0], sizes = [8, 8, 16], strides = [1, 1, 1]} : vector<10x8x16xbf16> to vector<8x8x16xbf16>
    %107 = vector.shape_cast %106 : vector<8x8x16xbf16> to vector<64x16xbf16>
    %c6_78 = arith.constant 6 : index
    %c0_79 = arith.constant 0 : index
    %c0_80 = arith.constant 0 : index
    %108 = vector.load %arg4[%c6_78, %c0_79, %c0_80] : memref<9x16x64xbf16, #tpu.memory_space<vmem>>, vector<1x16x64xbf16>
    %109 = vector.shape_cast %108 : vector<1x16x64xbf16> to vector<16x64xbf16>
    %cst_81 = arith.constant dense<0.000000e+00> : vector<64x64xf32>
    %110 = tpu.matmul %107, %109, %cst_81 {dimension_numbers = #tpu.dot_dimension_numbers<[1], [0], [0], [1], [0, 0, 1, 1], [], []>} : vector<64x16xbf16>, vector<16x64xbf16>, vector<64x64xf32> -> vector<64x64xf32>
    %111 = arith.addf %105, %110 : vector<64x64xf32>
    %c0_82 = arith.constant 0 : index
    %c8_83 = arith.constant 8 : index
    %c0_84 = arith.constant 0 : index
    %112 = vector.load %arg17[%c0_82, %c8_83, %c0_84] : memref<10x24x16xf32, #tpu.memory_space<vmem>>, vector<10x8x16xf32>
    %113 = arith.truncf %112 : vector<10x8x16xf32> to vector<10x8x16xbf16>
    %114 = vector.extract_strided_slice %113 {offsets = [0, 0, 0], sizes = [8, 8, 16], strides = [1, 1, 1]} : vector<10x8x16xbf16> to vector<8x8x16xbf16>
    %115 = vector.shape_cast %114 : vector<8x8x16xbf16> to vector<64x16xbf16>
    %c1_85 = arith.constant 1 : index
    %c0_86 = arith.constant 0 : index
    %c0_87 = arith.constant 0 : index
    %116 = vector.load %arg4[%c1_85, %c0_86, %c0_87] : memref<9x16x64xbf16, #tpu.memory_space<vmem>>, vector<1x16x64xbf16>
    %117 = vector.shape_cast %116 : vector<1x16x64xbf16> to vector<16x64xbf16>
    %cst_88 = arith.constant dense<0.000000e+00> : vector<64x64xf32>
    %118 = tpu.matmul %115, %117, %cst_88 {dimension_numbers = #tpu.dot_dimension_numbers<[1], [0], [0], [1], [0, 0, 1, 1], [], []>} : vector<64x16xbf16>, vector<16x64xbf16>, vector<64x64xf32> -> vector<64x64xf32>
    %119 = arith.addf %111, %118 : vector<64x64xf32>
    %120 = vector.extract_strided_slice %113 {offsets = [1, 0, 0], sizes = [8, 8, 16], strides = [1, 1, 1]} : vector<10x8x16xbf16> to vector<8x8x16xbf16>
    %121 = vector.shape_cast %120 : vector<8x8x16xbf16> to vector<64x16xbf16>
    %c4_89 = arith.constant 4 : index
    %c0_90 = arith.constant 0 : index
    %c0_91 = arith.constant 0 : index
    %122 = vector.load %arg4[%c4_89, %c0_90, %c0_91] : memref<9x16x64xbf16, #tpu.memory_space<vmem>>, vector<1x16x64xbf16>
    %123 = vector.shape_cast %122 : vector<1x16x64xbf16> to vector<16x64xbf16>
    %cst_92 = arith.constant dense<0.000000e+00> : vector<64x64xf32>
    %124 = tpu.matmul %121, %123, %cst_92 {dimension_numbers = #tpu.dot_dimension_numbers<[1], [0], [0], [1], [0, 0, 1, 1], [], []>} : vector<64x16xbf16>, vector<16x64xbf16>, vector<64x64xf32> -> vector<64x64xf32>
    %125 = arith.addf %119, %124 : vector<64x64xf32>
    %126 = vector.extract_strided_slice %113 {offsets = [2, 0, 0], sizes = [8, 8, 16], strides = [1, 1, 1]} : vector<10x8x16xbf16> to vector<8x8x16xbf16>
    %127 = vector.shape_cast %126 : vector<8x8x16xbf16> to vector<64x16xbf16>
    %c7_93 = arith.constant 7 : index
    %c0_94 = arith.constant 0 : index
    %c0_95 = arith.constant 0 : index
    %128 = vector.load %arg4[%c7_93, %c0_94, %c0_95] : memref<9x16x64xbf16, #tpu.memory_space<vmem>>, vector<1x16x64xbf16>
    %129 = vector.shape_cast %128 : vector<1x16x64xbf16> to vector<16x64xbf16>
    %cst_96 = arith.constant dense<0.000000e+00> : vector<64x64xf32>
    %130 = tpu.matmul %127, %129, %cst_96 {dimension_numbers = #tpu.dot_dimension_numbers<[1], [0], [0], [1], [0, 0, 1, 1], [], []>} : vector<64x16xbf16>, vector<16x64xbf16>, vector<64x64xf32> -> vector<64x64xf32>
    %131 = arith.addf %125, %130 : vector<64x64xf32>
    %c0_97 = arith.constant 0 : index
    %c9_98 = arith.constant 9 : index
    %c0_99 = arith.constant 0 : index
    %132 = vector.load %arg17[%c0_97, %c9_98, %c0_99] : memref<10x24x16xf32, #tpu.memory_space<vmem>>, vector<10x8x16xf32>
    %133 = arith.truncf %132 : vector<10x8x16xf32> to vector<10x8x16xbf16>
    %134 = vector.extract_strided_slice %133 {offsets = [0, 0, 0], sizes = [8, 8, 16], strides = [1, 1, 1]} : vector<10x8x16xbf16> to vector<8x8x16xbf16>
    %135 = vector.shape_cast %134 : vector<8x8x16xbf16> to vector<64x16xbf16>
    %c2_100 = arith.constant 2 : index
    %c0_101 = arith.constant 0 : index
    %c0_102 = arith.constant 0 : index
    %136 = vector.load %arg4[%c2_100, %c0_101, %c0_102] : memref<9x16x64xbf16, #tpu.memory_space<vmem>>, vector<1x16x64xbf16>
    %137 = vector.shape_cast %136 : vector<1x16x64xbf16> to vector<16x64xbf16>
    %cst_103 = arith.constant dense<0.000000e+00> : vector<64x64xf32>
    %138 = tpu.matmul %135, %137, %cst_103 {dimension_numbers = #tpu.dot_dimension_numbers<[1], [0], [0], [1], [0, 0, 1, 1], [], []>} : vector<64x16xbf16>, vector<16x64xbf16>, vector<64x64xf32> -> vector<64x64xf32>
    %139 = arith.addf %131, %138 : vector<64x64xf32>
    %140 = vector.extract_strided_slice %133 {offsets = [1, 0, 0], sizes = [8, 8, 16], strides = [1, 1, 1]} : vector<10x8x16xbf16> to vector<8x8x16xbf16>
    %141 = vector.shape_cast %140 : vector<8x8x16xbf16> to vector<64x16xbf16>
    %c5_104 = arith.constant 5 : index
    %c0_105 = arith.constant 0 : index
    %c0_106 = arith.constant 0 : index
    %142 = vector.load %arg4[%c5_104, %c0_105, %c0_106] : memref<9x16x64xbf16, #tpu.memory_space<vmem>>, vector<1x16x64xbf16>
    %143 = vector.shape_cast %142 : vector<1x16x64xbf16> to vector<16x64xbf16>
    %cst_107 = arith.constant dense<0.000000e+00> : vector<64x64xf32>
    %144 = tpu.matmul %141, %143, %cst_107 {dimension_numbers = #tpu.dot_dimension_numbers<[1], [0], [0], [1], [0, 0, 1, 1], [], []>} : vector<64x16xbf16>, vector<16x64xbf16>, vector<64x64xf32> -> vector<64x64xf32>
    %145 = arith.addf %139, %144 : vector<64x64xf32>
    %146 = vector.extract_strided_slice %133 {offsets = [2, 0, 0], sizes = [8, 8, 16], strides = [1, 1, 1]} : vector<10x8x16xbf16> to vector<8x8x16xbf16>
    %147 = vector.shape_cast %146 : vector<8x8x16xbf16> to vector<64x16xbf16>
    %c8_108 = arith.constant 8 : index
    %c0_109 = arith.constant 0 : index
    %c0_110 = arith.constant 0 : index
    %148 = vector.load %arg4[%c8_108, %c0_109, %c0_110] : memref<9x16x64xbf16, #tpu.memory_space<vmem>>, vector<1x16x64xbf16>
    %149 = vector.shape_cast %148 : vector<1x16x64xbf16> to vector<16x64xbf16>
    %cst_111 = arith.constant dense<0.000000e+00> : vector<64x64xf32>
    %150 = tpu.matmul %147, %149, %cst_111 {dimension_numbers = #tpu.dot_dimension_numbers<[1], [0], [0], [1], [0, 0, 1, 1], [], []>} : vector<64x16xbf16>, vector<16x64xbf16>, vector<64x64xf32> -> vector<64x64xf32>
    %151 = arith.addf %145, %150 : vector<64x64xf32>
    %c1_112 = arith.constant 1 : index
    %c8_113 = arith.constant 8 : index
    %c0_114 = arith.constant 0 : index
    %152 = vector.load %arg17[%c1_112, %c8_113, %c0_114] : memref<10x24x16xf32, #tpu.memory_space<vmem>>, vector<8x8x16xf32>
    %cst_115 = arith.constant dense<0.000000e+00> : vector<16xf32>
    %153 = vector.multi_reduction <add>, %152, %cst_115 [0, 1] : vector<8x8x16xf32> to vector<16xf32>
    %154 = vector.shape_cast %153 : vector<16xf32> to vector<1x1x16xf32>
    %155 = vector.shape_cast %154 : vector<1x1x16xf32> to vector<1x16xf32>
    %cst_116 = arith.constant 1.562500e-02 : f32
    %156 = vector.broadcast %cst_116 : f32 to vector<1x16xf32>
    %157 = arith.mulf %155, %156 : vector<1x16xf32>
    %c0_117 = arith.constant 0 : index
    %c0_118 = arith.constant 0 : index
    %158 = vector.load %arg5[%c0_117, %c0_118] : memref<16x64xf32, #tpu.memory_space<vmem>>, vector<16x64xf32>
    %cst_119 = arith.constant dense<0.000000e+00> : vector<1x64xf32>
    %159 = tpu.matmul %157, %158, %cst_119 {dimension_numbers = #tpu.dot_dimension_numbers<[1], [0], [0], [1], [0, 0, 1, 1], [], []>} : vector<1x16xf32>, vector<16x64xf32>, vector<1x64xf32> -> vector<1x64xf32>
    %c0_120 = arith.constant 0 : index
    %c0_121 = arith.constant 0 : index
    %160 = vector.load %arg6[%c0_120, %c0_121] : memref<1x64xf32, #tpu.memory_space<vmem>>, vector<1x64xf32>
    %161 = arith.addf %159, %160 : vector<1x64xf32>
    %cst_122 = arith.constant 0.000000e+00 : f32
    %162 = vector.broadcast %cst_122 : f32 to vector<1x64xf32>
    %163 = arith.maximumf %161, %162 : vector<1x64xf32>
    %c0_123 = arith.constant 0 : index
    %c0_124 = arith.constant 0 : index
    %164 = vector.load %arg7[%c0_123, %c0_124] : memref<64x64xf32, #tpu.memory_space<vmem>>, vector<64x64xf32>
    %cst_125 = arith.constant dense<0.000000e+00> : vector<1x64xf32>
    %165 = tpu.matmul %163, %164, %cst_125 {dimension_numbers = #tpu.dot_dimension_numbers<[1], [0], [0], [1], [0, 0, 1, 1], [], []>} : vector<1x64xf32>, vector<64x64xf32>, vector<1x64xf32> -> vector<1x64xf32>
    %c0_126 = arith.constant 0 : index
    %c0_127 = arith.constant 0 : index
    %166 = vector.load %arg8[%c0_126, %c0_127] : memref<1x64xf32, #tpu.memory_space<vmem>>, vector<1x64xf32>
    %167 = arith.addf %165, %166 : vector<1x64xf32>
    %168 = arith.negf %167 : vector<1x64xf32>
    %169 = math.exp %168 : vector<1x64xf32>
    %cst_128 = arith.constant 1.000000e+00 : f32
    %170 = vector.broadcast %cst_128 : f32 to vector<1x64xf32>
    %171 = arith.addf %170, %169 : vector<1x64xf32>
    %172 = arith.divf %170, %171 : vector<1x64xf32>
    %173 = vector.broadcast %172 : vector<1x64xf32> to vector<64x64xf32>
    %174 = arith.mulf %151, %173 : vector<64x64xf32>
    %c0_129 = arith.constant 0 : index
    %c0_130 = arith.constant 0 : index
    %175 = vector.load %arg13[%c0_129, %c0_130] : memref<1x64xf32, #tpu.memory_space<vmem>>, vector<1x64xf32>
    %176 = vector.broadcast %175 : vector<1x64xf32> to vector<64x64xf32>
    %177 = arith.mulf %174, %176 : vector<64x64xf32>
    %c0_131 = arith.constant 0 : index
    %c0_132 = arith.constant 0 : index
    %178 = vector.load %arg14[%c0_131, %c0_132] : memref<1x64xf32, #tpu.memory_space<vmem>>, vector<1x64xf32>
    %179 = vector.broadcast %178 : vector<1x64xf32> to vector<64x64xf32>
    %180 = arith.addf %177, %179 : vector<64x64xf32>
    %c0_133 = arith.constant 0 : index
    %c0_134 = arith.constant 0 : index
    %c0_135 = arith.constant 0 : index
    %c0_136 = arith.constant 0 : index
    %181 = vector.load %arg1[%c0_133, %c0_134, %c0_135, %c0_136] : memref<1x8x8x64xf32, #tpu.memory_space<vmem>>, vector<1x8x8x64xf32>
    %182 = vector.shape_cast %181 : vector<1x8x8x64xf32> to vector<8x8x64xf32>
    %183 = vector.shape_cast %182 : vector<8x8x64xf32> to vector<64x64xf32>
    %184 = arith.addf %180, %183 : vector<64x64xf32>
    %cst_137 = arith.constant 0.000000e+00 : f32
    %185 = vector.broadcast %cst_137 : f32 to vector<64x64xf32>
    %186 = arith.maximumf %184, %185 : vector<64x64xf32>
    %187 = vector.shape_cast %186 : vector<64x64xf32> to vector<8x8x64xf32>
    %c0_138 = arith.constant 0 : index
    %c0_139 = arith.constant 0 : index
    %c0_140 = arith.constant 0 : index
    %c0_141 = arith.constant 0 : index
    %188 = vector.load %arg15[%c0_138, %c0_139, %c0_140, %c0_141] : memref<1x8x8x64xf32, #tpu.memory_space<vmem>>, vector<1x8x8x64xf32>
    %189 = vector.shape_cast %188 : vector<1x8x8x64xf32> to vector<8x8x64xf32>
    %190 = vector.shape_cast %187 : vector<8x8x64xf32> to vector<1x8x8x64xf32>
    tpu.vector_store %arg15[%c0_138, %c0_139, %c0_140, %c0_141], %190 {strides = array<i32>} : memref<1x8x8x64xf32, #tpu.memory_space<vmem>>, vector<1x8x8x64xf32>,
    return
  }
  func.func @transform_0(%arg0: i32) -> (i32, i32, i32, i32) {
    %c0_i32 = arith.constant 0 : i32
    %c0_i32_0 = arith.constant 0 : i32
    %c0_i32_1 = arith.constant 0 : i32
    %c0_i32_2 = arith.constant 0 : i32
    return %arg0, %c0_i32, %c0_i32_0, %c0_i32_1 : i32, i32, i32, i32
  }
  func.func @transform_1(%arg0: i32) -> (i32, i32) {
    %c0_i32 = arith.constant 0 : i32
    %c0_i32_0 = arith.constant 0 : i32
    %c0_i32_1 = arith.constant 0 : i32
    return %c0_i32, %c0_i32_0 : i32, i32
  }
  func.func @transform_2(%arg0: i32) -> (i32, i32, i32) {
    %c0_i32 = arith.constant 0 : i32
    %c0_i32_0 = arith.constant 0 : i32
    %c0_i32_1 = arith.constant 0 : i32
    %c0_i32_2 = arith.constant 0 : i32
    return %c0_i32, %c0_i32_0, %c0_i32_1 : i32, i32, i32
  }
  func.func @transform_3(%arg0: i32) -> (i32, i32, i32) {
    %c0_i32 = arith.constant 0 : i32
    %c0_i32_0 = arith.constant 0 : i32
    %c0_i32_1 = arith.constant 0 : i32
    %c0_i32_2 = arith.constant 0 : i32
    return %c0_i32, %c0_i32_0, %c0_i32_1 : i32, i32, i32
  }
  func.func @transform_4(%arg0: i32) -> (i32, i32) {
    %c0_i32 = arith.constant 0 : i32
    %c0_i32_0 = arith.constant 0 : i32
    %c0_i32_1 = arith.constant 0 : i32
    return %c0_i32, %c0_i32_0 : i32, i32
  }
  func.func @transform_5(%arg0: i32) -> (i32, i32) {
    %c0_i32 = arith.constant 0 : i32
    %c0_i32_0 = arith.constant 0 : i32
    %c0_i32_1 = arith.constant 0 : i32
    return %c0_i32, %c0_i32_0 : i32, i32
  }
  func.func @transform_6(%arg0: i32) -> (i32, i32) {
    %c0_i32 = arith.constant 0 : i32
    %c0_i32_0 = arith.constant 0 : i32
    %c0_i32_1 = arith.constant 0 : i32
    return %c0_i32, %c0_i32_0 : i32, i32
  }
  func.func @transform_7(%arg0: i32) -> (i32, i32) {
    %c0_i32 = arith.constant 0 : i32
    %c0_i32_0 = arith.constant 0 : i32
    %c0_i32_1 = arith.constant 0 : i32
    return %c0_i32, %c0_i32_0 : i32, i32
  }
  func.func @transform_8(%arg0: i32) -> (i32, i32) {
    %c0_i32 = arith.constant 0 : i32
    %c0_i32_0 = arith.constant 0 : i32
    %c0_i32_1 = arith.constant 0 : i32
    return %c0_i32, %c0_i32_0 : i32, i32
  }
  func.func @transform_9(%arg0: i32) -> (i32, i32) {
    %c0_i32 = arith.constant 0 : i32
    %c0_i32_0 = arith.constant 0 : i32
    %c0_i32_1 = arith.constant 0 : i32
    return %c0_i32, %c0_i32_0 : i32, i32
  }
  func.func @transform_10(%arg0: i32) -> (i32, i32) {
    %c0_i32 = arith.constant 0 : i32
    %c0_i32_0 = arith.constant 0 : i32
    %c0_i32_1 = arith.constant 0 : i32
    return %c0_i32, %c0_i32_0 : i32, i32
  }
  func.func @transform_11(%arg0: i32) -> (i32, i32) {
    %c0_i32 = arith.constant 0 : i32
    %c0_i32_0 = arith.constant 0 : i32
    %c0_i32_1 = arith.constant 0 : i32
    return %c0_i32, %c0_i32_0 : i32, i32
  }
  func.func @transform_12(%arg0: i32) -> (i32, i32) {
    %c0_i32 = arith.constant 0 : i32
    %c0_i32_0 = arith.constant 0 : i32
    %c0_i32_1 = arith.constant 0 : i32
    return %c0_i32, %c0_i32_0 : i32, i32
  }
  func.func @transform_13(%arg0: i32) -> (i32, i32) {
    %c0_i32 = arith.constant 0 : i32
    %c0_i32_0 = arith.constant 0 : i32
    %c0_i32_1 = arith.constant 0 : i32
    return %c0_i32, %c0_i32_0 : i32, i32
  }
  func.func @transform_14(%arg0: i32) -> (i32, i32, i32, i32) {
    %c0_i32 = arith.constant 0 : i32
    %c0_i32_0 = arith.constant 0 : i32
    %c0_i32_1 = arith.constant 0 : i32
    %c0_i32_2 = arith.constant 0 : i32
    return %arg0, %c0_i32, %c0_i32_0, %c0_i32_1 : i32, i32, i32, i32
  }
}

</mosaic_0001>

<bundles_post_ra>
// kernel: bottleneck_forward.1
= control target key start
LH: loop header
LB: loop body
LE: loop exit
PB: predicated region body
PF: predicated region fallthrough
CT: control target
= control target key end

     0   :  { %s4481_s0 = inlined_call_operand.vmem [shape: f32[2,8,8,64], index: 0, kind: input, shape index: {}]   ;;  %s4482_s1 = inlined_call_operand.vmem [shape: bf16[64,16], index: 1, kind: input, shape index: {}]   ;;  %s4483_s2 = inlined_call_operand.vmem [shape: bf16[9,16,16], index: 2, kind: input, shape index: {}]   ;;  %s4484_s3 = inlined_call_operand.vmem [shape: bf16[9,16,64], index: 3, kind: input, shape index: {}]   ;;  %s4485_s4 = inlined_call_operand.vmem [shape: f32[16,64], index: 4, kind: input, shape index: {}]   ;;  %s4486_s5 = inlined_call_operand.vmem [shape: f32[1,64], index: 5, kind: input, shape index: {}]   ;;  %s4487_s6 = inlined_call_operand.vmem [shape: f32[64,64], index: 6, kind: input, shape index: {}]   ;;  %s4488_s7 = inlined_call_operand.vmem [shape: f32[1,64], index: 7, kind: input, shape index: {}]   ;;  %s4489_s8 = inlined_call_operand.vmem [shape: f32[1,16], index: 8, kind: input, shape index: {}]   ;;  %s4490_s9 = inlined_call_operand.vmem [shape: f32[1,16], index: 9, kind: input, shape index: {}]   ;;  %s4491_s10 = inlined_call_operand.vmem [shape: f32[1,16], index: 10, kind: input, shape index: {}]   ;;  %s4492_s11 = inlined_call_operand.vmem [shape: f32[1,16], index: 11, kind: input, shape index: {}]   ;;  %s4493_s12 = inlined_call_operand.vmem [shape: f32[1,64], index: 12, kind: input, shape index: {}]   ;;  %s4494_s13 = inlined_call_operand.vmem [shape: f32[1,64], index: 13, kind: input, shape index: {}]   ;;  %s4495_s14 = inlined_call_operand.hbm [shape: f32[2,8,8,64], index: 14, kind: output, shape index: {}]  }
   0x1   :  { %4497 = sst [smem:[#allocation9_spill]] %s4481_s0 }
   0x2   :  { %19 = vsyncpa [#allocation5], 0 }
   0x3   :  { %21 = vsyncpa [#allocation5 + $0x1], 0  ;;  %s3938_s29 = smov 0   ;;  %s3940_s30 = smov 0  }
   0x4   :  { %s3942_s15 = smov 0   ;;  %s3944_s16 = smov 0  }
   0x5 LB: > { %4498 = sst [smem:[#allocation7_spill]] %s3851_s15  ;;  %s3959_s17 = sadd.s32 4294967295, %s3855_s16   ;;  %s3855_s16 = sphi %s3944_s16, %s4507_s16   ;;  %s3851_s15 = sphi %s3942_s15, %s4504_s15   ;;  %s3847_s30 = sphi %s3940_s30, %s4506_s30   ;;  %s3843_s29 = sphi %s3938_s29, %s4505_s29  }
   0x6   : > { %s2987_s18 = sadd.s32 4294967294, %s3855_s16   ;;  %s3963_s19 = sadd.s32 1, %s3855_s16  }
   0x7   : > { %s333_s20 = sadd.s32 1, %s3851_s15  ;;  %s330_s21 = ssub.s32 %s3855_s16, %s3963_s19 }
   0x8   : > { %p343_p0 = scmp.ne.s32.totalorder %s3851_s15, %s3847_s30  ;;  %p331_p1 = scmp.eq.s32.totalorder %s330_s21, 0 }
   0x9   : > { %p344_p2 = scmp.eq.s32.totalorder %s3959_s17, 1  ;;  %p349_p3 = scmp.ne.s32.totalorder %s3847_s30, %s3843_s29 }
   0xa   : > { %p350_p4 = scmp.eq.s32.totalorder %s2987_s18, 1  ;;  %p2990_p7 = scmp.ge.s32.totalorder %s3855_s16, 1 }
   0xb   : > { %s3974_s22 = scalar_select %p331_p1, %s3851_s15, %s333_s20  }
   0xc   : > { %p3976_p5 = por %p344_p2, %p343_p0  ;;  %p3980_p6 = por %p350_p4, %p349_p3 }
   0xd   : > { %4499 = sst [smem:[#allocation8_spill]] %s3974_s22  ;;  %p415_p8 = scmp.lt.s32.totalorder %s3855_s16, 3 }
   0xf   : > { %p416_p9 = pnand %p2990_p7, %p415_p8 }
  0x10   : > { %v3767_v0 = vld [vmem:[%s4482_s1] sm:$0xff] (!%p416_p9)   ;;  %p461_p10 = scmp.lt.s32.totalorder (!%p416_p9), %s3959_s17, 1  ;;  %v3993_v1 = vld [vmem:[%s4482_s1 + $0x8] sm:$0xff] (!%p416_p9)   ;;  %v3999_v2 = vld [vmem:[%s4482_s1 + $0x10] sm:$0xff] (!%p416_p9)   ;;  %vm467_vm0 = vcmask (!%p416_p9), 130048   ;;  %s4502_s0 = sld [smem:[#allocation9_spill]] (!%p416_p9) }
  0x11   : > { %419 = sbr.rel (%p416_p9) target bundleno = 1138 (0x472), region = 76  ;;  %3358 = vmatprep.subr.bf16.mxu0 (!%p416_p9), %v3767_v0  ;;  %v3857_v3 = vmov (!%p416_p9), 0.0   ;;  %vm572_vm1 = vcmask (!%p416_p9), 523264   ;;  %v3770_v7 = vld [vmem:[%s4482_s1 + $0x18] sm:$0xff] (!%p416_p9)   ;;  %v3772_v18 = vld [vmem:[%s4483_s2] sm:$0xff] (!%p416_p9)   ;;  %v3773_v59 = vld [vmem:[%s4483_s2 + $0x30] sm:$0xff] (!%p416_p9)  }
  0x12   : > { %3359 = vmatpush3.bf16.msra.mxu0 (!%p416_p9), %v3767_v0  ;;  %478 = vst.msk [vmem:[#allocation2 + $0x50] sm:$0xff] (!%p416_p9), %vm467_vm0, %v3857_v3  ;;  %468 = vst.msk [vmem:[#allocation2] sm:$0xff] (!%p416_p9), %vm467_vm0, %v3857_v3  ;;  %v3771_v17 = vld [vmem:[%s4483_s2 + $0x18] sm:$0xff] (!%p416_p9)   ;;  %v3002_v19 = vld [vmem:[%s4489_s8] ss:$0 sm:$0xff] (!%p416_p9)  ;;  %vm3859_vm2 = vmmov (!%p416_p9), 0  }
  0x13   : > { %3360 = vmatprep.subr.bf16.mxu0 (!%p416_p9), %v3993_v1  ;;  %469 = vst.msk [vmem:[#allocation2 + $0x8] sm:$0xff] (!%p416_p9), %vm467_vm0, %v3857_v3  ;;  %470 = vst.msk [vmem:[#allocation2 + $0x10] sm:$0xff] (!%p416_p9), %vm467_vm0, %v3857_v3  ;;  %3374 = vmatprep.subr.bf16.mxu1 (!%p416_p9), %v3771_v17  ;;  %v3003_v21 = vld [vmem:[%s4490_s9] ss:$0 sm:$0xff] (!%p416_p9)  ;;  %s3247_s20 = sshll.u32 (!%p416_p9), %s3959_s17, 10 }
  0x14   : > { %471 = vst.msk [vmem:[#allocation2 + $0x18] sm:$0xff] (!%p416_p9), %vm467_vm0, %v3857_v3  ;;  %472 = vst.msk [vmem:[#allocation2 + $0x20] sm:$0xff] (!%p416_p9), %vm467_vm0, %v3857_v3  ;;  %3375 = vmatpush3.bf16.msra.mxu1 (!%p416_p9), %v3771_v17  ;;  %s4426_s28 = scalar_lea.hbm (!%p416_p9), %s4495_s14, %s3247_s20 }
  0x15   : > { %473 = vst.msk [vmem:[#allocation2 + $0x28] sm:$0xff] (!%p416_p9), %vm467_vm0, %v3857_v3  ;;  %474 = vst.msk [vmem:[#allocation2 + $0x30] sm:$0xff] (!%p416_p9), %vm467_vm0, %v3857_v3  ;;  %3384 = vmatprep.subr.bf16.mxu1 (!%p416_p9), %v3772_v18 }
  0x16   : > { %475 = vst.msk [vmem:[#allocation2 + $0x38] sm:$0xff] (!%p416_p9), %vm467_vm0, %v3857_v3  ;;  %476 = vst.msk [vmem:[#allocation2 + $0x40] sm:$0xff] (!%p416_p9), %vm467_vm0, %v3857_v3  ;;  %3361 = vmatpush3.bf16.msra.mxu0 (!%p416_p9), %v3993_v1 }
  0x17   : > { %477 = vst.msk [vmem:[#allocation2 + $0x48] sm:$0xff] (!%p416_p9), %vm467_vm0, %v3857_v3  ;;  %479 = vst.msk [vmem:[#allocation2 + $0x58] sm:$0xff] (!%p416_p9), %vm467_vm0, %v3857_v3  ;;  %3362 = vmatprep.subr.bf16.mxu0 (!%p416_p9), %v3999_v2 }
  0x18   : > { %s462_s18 = scalar_select %p461_p10, %s3959_s17, 1  ;;  %480 = vst.msk [vmem:[#allocation2 + $0x60] sm:$0xff] %vm467_vm0, %v3857_v3  ;;  %481 = vst.msk [vmem:[#allocation2 + $0x68] sm:$0xff] %vm467_vm0, %v3857_v3 }
  0x19   : > { %482 = vst.msk [vmem:[#allocation2 + $0x70] sm:$0xff] %vm467_vm0, %v3857_v3  ;;  %483 = vst.msk [vmem:[#allocation2 + $0x78] sm:$0xff] %vm467_vm0, %v3857_v3 }
  0x1a   : > { %s3192_s25 = sshll.u32 %s462_s18, 6  ;;  %484 = vst.msk [vmem:[#allocation2 + $0x80] sm:$0xff] %vm467_vm0, %v3857_v3  ;;  %485 = vst.msk [vmem:[#allocation2 + $0x88] sm:$0xff] %vm467_vm0, %v3857_v3  ;;  %3363 = vmatpush3.bf16.msra.mxu0 %v3999_v2  ;;  %v697_v61 = vld [vmem:[#allocation2 + $0x7] sm:$0xff]  ;;  %s3860_s18 = smov [#allocation4]  }
  0x1b   : > { %s4005_s15 = scalar_lea.vmem %s4502_s0, %s3192_s25  ;;  %486 = vst.msk [vmem:[#allocation2 + $0x90] sm:$0xff] %vm467_vm0, %v3857_v3  ;;  %487 = vst.msk [vmem:[#allocation2 + $0x98] sm:$0xff] %vm467_vm0, %v3857_v3  ;;  %3364 = vmatprep.subr.bf16.mxu0 %v3770_v7  ;;  %s458_s25 = sand.u32 1, %s3847_s30  }
  0x1c   : > { %488 = vst.msk [vmem:[#allocation2 + $0xa0] sm:$0xff] %vm467_vm0, %v3857_v3  ;;  %489 = vst.msk [vmem:[#allocation2 + $0xa8] sm:$0xff] %vm467_vm0, %v3857_v3  ;;  %v528_v4 = vld [vmem:[%s4005_s15] sm:$0xff]  ;;  %v529_v5 = vld [vmem:[%s4005_s15 + $0x8] sm:$0xff]  ;;  %s4408_s27 = sshll.u32 %s458_s25, 6  ;;  %s4440_s17 = scalar_lea.sflag [#allocation5], %s458_s25 }
  0x1d   : > { %490 = vst.msk [vmem:[#allocation2 + $0xb0] sm:$0xff] %vm467_vm0, %v3857_v3  ;;  %491 = vst.msk [vmem:[#allocation2 + $0xb8] sm:$0xff] %vm467_vm0, %v3857_v3  ;;  %v536_v6 = vpack.c.bf16 %v529_v5, %v528_v4  ;;  %v530_v8 = vld [vmem:[%s4005_s15 + $0x10] sm:$0xff]  ;;  %v531_v9 = vld [vmem:[%s4005_s15 + $0x18] sm:$0xff]  ;;  %s460_s21 = scalar_lea.vmem [#allocation4], %s4408_s27  ;;  %s3797_s20 = sshll.u32 %s3860_s18, 4  ;;  %s3798_s20 = int_to_ptr.vmem [resolvable:$false] %s3797_s20 }
  0x1e   : > { %492 = vst.msk [vmem:[#allocation2 + $0xc0] sm:$0xff] %vm467_vm0, %v3857_v3  ;;  %493 = vst.msk [vmem:[#allocation2 + $0xc8] sm:$0xff] %vm467_vm0, %v3857_v3  ;;  %v532_v10 = vld [vmem:[%s4005_s15 + $0x20] sm:$0xff]  ;;  %v533_v11 = vld [vmem:[%s4005_s15 + $0x28] sm:$0xff]  ;;  %v537_v12 = vpack.c.bf16 %v531_v9, %v530_v8  ;;  %3365 = vmatpush3.bf16.msra.mxu0 %v3770_v7  ;;  %s2925_s26 = sshll.u32 %s460_s21, 4  ;;  %s4428_s26 = int_to_ptr.vmem [resolvable:$true] %s2925_s26 }
  0x1f   : > { %494 = vst.msk [vmem:[#allocation2 + $0xd0] sm:$0xff] %vm467_vm0, %v3857_v3  ;;  %495 = vst.msk [vmem:[#allocation2 + $0xd8] sm:$0xff] %vm467_vm0, %v3857_v3  ;;  %3366 = vmatprep.mubr.msk.bf16.mxu0 %vm572_vm1, %v536_v6  ;;  %v538_v13 = vpack.c.bf16 %v533_v11, %v532_v10  ;;  %v534_v14 = vld [vmem:[%s4005_s15 + $0x30] sm:$0xff]  ;;  %v535_v15 = vld [vmem:[%s4005_s15 + $0x38] sm:$0xff]  ;;  %s3793_s27 = scalar_lea.vmem %s4428_s26, 1024  ;;  %p3800_p0 = scmp.lt.s32.totalorder %s4428_s26, %s3798_s20 }
  0x20   : > { %496 = vst.msk [vmem:[#allocation2 + $0xe0] sm:$0xff] %vm467_vm0, %v3857_v3  ;;  %497 = vst.msk [vmem:[#allocation2 + $0xe8] sm:$0xff] %vm467_vm0, %v3857_v3  ;;  %v539_v16 = vpack.c.bf16 %v535_v15, %v534_v14  ;;  %v3774_v6 = vld [vmem:[%s4483_s2 + $0x8] sm:$0xff]   ;;  %v3775_v9 = vld [vmem:[%s4483_s2 + $0x20] sm:$0xff]   ;;  %p3794_p11 = scmp.ne.s32.totalorder %s4428_s26, %s3793_s27 }
  0x21   : > { %498 = vst.msk [vmem:[#allocation3] sm:$0xff] %vm467_vm0, %v3857_v3  ;;  %499 = vst.msk [vmem:[#allocation3 + $0x8] sm:$0xff] %vm467_vm0, %v3857_v3  ;;  %3367 = vmatmul.mubr.msk.bf16.vlgmr.msra.gmra.mrb[0].mxu0 %vm572_vm1, %v537_v12  ;;  %v1002_v11 = vld [vmem:[#allocation2 + $0x8] sm:$0xff] }
  0x22   : > { %500 = vst.msk [vmem:[#allocation3 + $0x10] sm:$0xff] %vm467_vm0, %v3857_v3  ;;  %501 = vst.msk [vmem:[#allocation3 + $0x18] sm:$0xff] %vm467_vm0, %v3857_v3  ;;  %3370 = vmatprep.mubr.msk.bf16.mxu0 %vm572_vm1, %v538_v13  ;;  %p3795_p12 = pnand %p3794_p11, %p3976_p5 }
  0x23   : > { %502 = vst.msk [vmem:[#allocation3 + $0x20] sm:$0xff] %vm467_vm0, %v3857_v3  ;;  %503 = vst.msk [vmem:[#allocation3 + $0x28] sm:$0xff] %vm467_vm0, %v3857_v3 }
  0x24   : > { %504 = vst.msk [vmem:[#allocation3 + $0x30] sm:$0xff] %vm467_vm0, %v3857_v3  ;;  %505 = vst.msk [vmem:[#allocation3 + $0x38] sm:$0xff] %vm467_vm0, %v3857_v3  ;;  %p3796_p13 = pneg %p3795_p12 }
  0x25   : > { %506 = vst.msk [vmem:[#allocation3 + $0x40] sm:$0xff] %vm467_vm0, %v3857_v3  ;;  %507 = vst.msk [vmem:[#allocation3 + $0x48] sm:$0xff] %vm467_vm0, %v3857_v3 }
  0x26   : > { %508 = vst.msk [vmem:[#allocation3 + $0x50] sm:$0xff] %vm467_vm0, %v3857_v3  ;;  %509 = vst.msk [vmem:[#allocation3 + $0x58] sm:$0xff] %vm467_vm0, %v3857_v3 }
  0x27   : > { %510 = vst.msk [vmem:[#allocation3 + $0x60] sm:$0xff] %vm467_vm0, %v3857_v3  ;;  %511 = vst.msk [vmem:[#allocation3 + $0x68] sm:$0xff] %vm467_vm0, %v3857_v3  ;;  %v706_v10 = vld [vmem:[#allocation2 + $0xdf] sm:$0xff] }
  0x28   : > { %512 = vst.msk [vmem:[#allocation3 + $0x70] sm:$0xff] %vm467_vm0, %v3857_v3  ;;  %513 = vst.msk [vmem:[#allocation3 + $0x78] sm:$0xff] %vm467_vm0, %v3857_v3 }
  0x29   : > { %514 = vst.msk [vmem:[#allocation3 + $0x80] sm:$0xff] %vm467_vm0, %v3857_v3  ;;  %515 = vst.msk [vmem:[#allocation3 + $0x88] sm:$0xff] %vm467_vm0, %v3857_v3  ;;  %3371 = vmatmul.mubr.msk.bf16.gmra.mrb[4].mxu0 %vm572_vm1, %v539_v16 }
  0x2a   : > { %516 = vst.msk [vmem:[#allocation3 + $0x90] sm:$0xff] %vm467_vm0, %v3857_v3  ;;  %517 = vst.msk [vmem:[#allocation3 + $0x98] sm:$0xff] %vm467_vm0, %v3857_v3 }
  0x2b   : > { %518 = vst.msk [vmem:[#allocation3 + $0xa0] sm:$0xff] %vm467_vm0, %v3857_v3  ;;  %519 = vst.msk [vmem:[#allocation3 + $0xa8] sm:$0xff] %vm467_vm0, %v3857_v3 }
  0x2c   : > { %520 = vst.msk [vmem:[#allocation3 + $0xb0] sm:$0xff] %vm467_vm0, %v3857_v3  ;;  %521 = vst.msk [vmem:[#allocation3 + $0xb8] sm:$0xff] %vm467_vm0, %v3857_v3 }
  0x2d   : > { %522 = vst.msk [vmem:[#allocation3 + $0xc0] sm:$0xff] %vm467_vm0, %v3857_v3  ;;  %523 = vst.msk [vmem:[#allocation3 + $0xc8] sm:$0xff] %vm467_vm0, %v3857_v3 }
  0x2e   : > { %524 = vst.msk [vmem:[#allocation3 + $0xd0] sm:$0xff] %vm467_vm0, %v3857_v3  ;;  %525 = vst.msk [vmem:[#allocation3 + $0xd8] sm:$0xff] %vm467_vm0, %v3857_v3 }
  0x2f   : > { %526 = vst.msk [vmem:[#allocation3 + $0xe0] sm:$0xff] %vm467_vm0, %v3857_v3  ;;  %527 = vst.msk [vmem:[#allocation3 + $0xe8] sm:$0xff] %vm467_vm0, %v3857_v3 }
  0xf4   : > { %v3368_v20 = vpop.f32.mrb[0].mxu0 }
  0xf5   : > { %v659_v22 = vmul.f32 %v3368_v20, %v3002_v19  ;;  %v619_v23 = vpop.f32.mrb[1].mxu0  ;;  %v3776_v20 = vld [vmem:[%s4483_s2 + $0x38] sm:$0xff]  }
  0xf6   : > { %v657_v24 = vmul.f32 %v3002_v19, %v619_v23  ;;  %v3369_v25 = vpop.f32.mrb[2].mxu0 }
  0xf7   : > { %v674_v26 = vadd.f32 %v3003_v21, %v659_v22  ;;  %v660_v27 = vmul.f32 %v3369_v25, %v3002_v19  ;;  %v622_v28 = vpop.f32.mrb[3].mxu0 }
  0xf8   : > { %v672_v29 = vadd.f32 %v3003_v21, %v657_v24  ;;  %v658_v30 = vmul.f32 %v3002_v19, %v622_v28 }
  0xf9   : > { %v682_v31 = vmax.f32 %v674_v26, 0.0  ;;  %v675_v32 = vadd.f32 %v3003_v21, %v660_v27  ;;  %v3777_v27 = vld [vmem:[%s4483_s2 + $0x10] sm:$0xff]  }
  0xfa   : > { %v680_v33 = vmax.f32 %v672_v29, 0.0  ;;  %v673_v34 = vadd.f32 %v3003_v21, %v658_v30 }
  0xfb   : > { %691 = vst.msk [vmem:[#allocation2 + $0x50] sm:$0xff] %vm467_vm0, %v682_v31  ;;  %v683_v35 = vmax.f32 %v675_v32, 0.0  ;;  %v3778_v31 = vld [vmem:[%s4483_s2 + $0x28] sm:$0xff]   ;;  %v1011_v32 = vld [vmem:[#allocation2 + $0xe0] sm:$0xff] }
  0xfc   : > { %689 = vst.msk [vmem:[#allocation2 + $0x20] sm:$0xff] %vm467_vm0, %v680_v33  ;;  %v681_v36 = vmax.f32 %v673_v34, 0.0  ;;  %v3372_v37 = vpop.f32.mrb[4].mxu0  ;;  %v1324_v33 = vld [vmem:[#allocation2 + $0x9] sm:$0xff] }
  0xfd   : > { %692 = vst.msk [vmem:[#allocation2 + $0x68] sm:$0xff] %vm467_vm0, %v683_v35  ;;  %v663_v38 = vmul.f32 %v3372_v37, %v3002_v19  ;;  %v635_v39 = vpop.f32.mrb[5].mxu0 }
  0xfe   : > { %690 = vst.msk [vmem:[#allocation2 + $0x38] sm:$0xff] %vm467_vm0, %v681_v36  ;;  %v661_v40 = vmul.f32 %v3002_v19, %v635_v39  ;;  %v3373_v41 = vpop.f32.mrb[6].mxu0 }
  0xff   : > { %v678_v42 = vadd.f32 %v3003_v21, %v663_v38  ;;  %v664_v43 = vmul.f32 %v3373_v41, %v3002_v19  ;;  %v638_v44 = vpop.f32.mrb[7].mxu0 }
 0x100   : > { %v676_v45 = vadd.f32 %v3003_v21, %v661_v40  ;;  %v662_v46 = vmul.f32 %v3002_v19, %v638_v44 }
 0x101   : > { %v686_v47 = vmax.f32 %v678_v42, 0.0  ;;  %v679_v48 = vadd.f32 %v3003_v21, %v664_v43  ;;  %v3779_v42 = vld [vmem:[%s4483_s2 + $0x40] sm:$0xff]  }
 0x102   : > { %v684_v49 = vmax.f32 %v676_v45, 0.0  ;;  %v677_v50 = vadd.f32 %v3003_v21, %v662_v46  ;;  %v700_v56 = vld [vmem:[#allocation2 + $0x4f] sm:$0xff] }
 0x103   : > { %695 = vst.msk [vmem:[#allocation2 + $0xb0] sm:$0xff] %vm467_vm0, %v686_v47  ;;  %v687_v51 = vmax.f32 %v679_v48, 0.0  ;;  %v698_v54 = vld [vmem:[#allocation2 + $0x1f] sm:$0xff]  ;;  %v1005_v17 = vld [vmem:[#allocation2 + $0x50] sm:$0xff] }
 0x104   : > { %693 = vst.msk [vmem:[#allocation2 + $0x80] sm:$0xff] %vm467_vm0, %v684_v49  ;;  %v685_v52 = vmax.f32 %v677_v50, 0.0  ;;  %v701_v53 = vld [vmem:[#allocation2 + $0x67] sm:$0xff]  ;;  %v3197_v4 = vpack.c.bf16 %v698_v54, %v697_v61  ;;  %v1327_v39 = vld [vmem:[#allocation2 + $0x51] sm:$0xff] }
 0x105   : > { %696 = vst.msk [vmem:[#allocation2 + $0xc8] sm:$0xff] %vm467_vm0, %v687_v51  ;;  %v699_v55 = vld [vmem:[#allocation2 + $0x37] sm:$0xff]  ;;  %v3194_v58 = vpack.c.bf16 %v701_v53, %v700_v56  ;;  %v1003_v12 = vld [vmem:[#allocation2 + $0x20] sm:$0xff]  ;;  %v1006_v19 = vld [vmem:[#allocation2 + $0x68] sm:$0xff] }
 0x106   : > { %694 = vst.msk [vmem:[#allocation2 + $0x98] sm:$0xff] %vm467_vm0, %v685_v52  ;;  %v3193_v57 = vpack.c.bf16 %v699_v55, %v698_v54  ;;  %v3198_v5 = vpack.c.bf16 %v700_v56, %v699_v55  ;;  %v3202_v14 = vpack.c.bf16 %v1003_v12, %v1002_v11  ;;  %v1004_v15 = vld [vmem:[#allocation2 + $0x38] sm:$0xff]  ;;  %v3207_v26 = vpack.c.bf16 %v1006_v19, %v1005_v17  ;;  %v1325_v34 = vld [vmem:[#allocation2 + $0x21] sm:$0xff]  ;;  %v1328_v41 = vld [vmem:[#allocation2 + $0x69] sm:$0xff] }
 0x107   : > { %v3206_v25 = vpack.c.bf16 %v1004_v15, %v1003_v12  ;;  %v3211_v36 = vpack.c.bf16 %v1325_v34, %v1324_v33  ;;  %v1326_v37 = vld [vmem:[#allocation2 + $0x39] sm:$0xff]  ;;  %v3216_v48 = vpack.c.bf16 %v1328_v41, %v1327_v39  ;;  %v1333_v52 = vld [vmem:[#allocation2 + $0xe1] sm:$0xff] }
 0x108   : > { %3376 = vmatprep.mubr.msk.bf16.mxu1 %vm467_vm0, %v3193_v57  ;;  %v3212_v40 = vpack.c.bf16 %v1327_v39, %v1326_v37  ;;  %v3215_v47 = vpack.c.bf16 %v1326_v37, %v1325_v34  ;;  %v3780_v54 = vld [vmem:[%s4484_s3 + $0x18] sm:$0xff]   ;;  %v2672_v55 = vld [vmem:[%s4485_s4] sm:$0xff]  ;;  %v2673_v56 = vld [vmem:[%s4485_s4 + $0x8] sm:$0xff] }
 0x109   : > { %3377 = vmatmul.mubr.msk.bf16.vlgmr.msra.gmra.mrb[0].mxu1 %vm467_vm0, %v3194_v58  ;;  %3464 = vmatprep.subr.bf16.mxu0 %v3780_v54  ;;  %v4234_v57 = vld [vmem:[%s4484_s3] sm:$0xff]   ;;  %v3858_v58 = vmov 0.0|0.0  }
 0x10a   : > { %3385 = vmatpush3.bf16.msra.mxu1 %v3772_v18  ;;  %v704_v1 = vld [vmem:[#allocation2 + $0xaf] sm:$0xff]  ;;  %v3203_v18 = vpack.c.bf16 %v1005_v17, %v1004_v15  ;;  %3465 = vmatpush3.bf16.msra.mxu0 %v3780_v54 }
 0x10b   : > { %3394 = vmatprep.subr.bf16.mxu1 %v3773_v59  ;;  %v702_v62 = vld [vmem:[#allocation2 + $0x7f] sm:$0xff]  ;;  %v1009_v23 = vld [vmem:[#allocation2 + $0xb0] sm:$0xff]  ;;  %3474 = vmatprep.subr.bf16.mxu0 %v4234_v57 }
 0x10c   : > { %v705_v60 = vld [vmem:[#allocation2 + $0xc7] sm:$0xff]  ;;  %v3199_v7 = vpack.c.bf16 %v702_v62, %v701_v53  ;;  %v1331_v45 = vld [vmem:[#allocation2 + $0xb1] sm:$0xff] }
 0x10d   : > { %v703_v63 = vld [vmem:[#allocation2 + $0x97] sm:$0xff]  ;;  %v3196_v2 = vpack.c.bf16 %v705_v60, %v704_v1  ;;  %v3201_v13 = vpack.c.bf16 %v706_v10, %v705_v60  ;;  %v1007_v16 = vld [vmem:[#allocation2 + $0x80] sm:$0xff]  ;;  %v1010_v29 = vld [vmem:[#allocation2 + $0xc8] sm:$0xff] }
 0x10e   : > { %v3195_v0 = vpack.c.bf16 %v703_v63, %v702_v62  ;;  %v3200_v8 = vpack.c.bf16 %v704_v1, %v703_v63  ;;  %v3204_v21 = vpack.c.bf16 %v1007_v16, %v1006_v19  ;;  %v1008_v22 = vld [vmem:[#allocation2 + $0x98] sm:$0xff]  ;;  %v3209_v30 = vpack.c.bf16 %v1010_v29, %v1009_v23  ;;  %v1329_v38 = vld [vmem:[#allocation2 + $0x81] sm:$0xff]  ;;  %v1332_v50 = vld [vmem:[#allocation2 + $0xc9] sm:$0xff] }
 0x10f   : > { %v3205_v24 = vpack.c.bf16 %v1009_v23, %v1008_v22  ;;  %v3208_v28 = vpack.c.bf16 %v1008_v22, %v1007_v16  ;;  %v3210_v35 = vpack.c.bf16 %v1011_v32, %v1010_v29  ;;  %v3213_v43 = vpack.c.bf16 %v1329_v38, %v1328_v41  ;;  %v1330_v44 = vld [vmem:[#allocation2 + $0x99] sm:$0xff] }
 0x110   : > { %3380 = vmatprep.mubr.msk.bf16.mxu1 %vm467_vm0, %v3195_v0  ;;  %v3214_v46 = vpack.c.bf16 %v1331_v45, %v1330_v44  ;;  %v3217_v49 = vpack.c.bf16 %v1330_v44, %v1329_v38  ;;  %v3218_v51 = vpack.c.bf16 %v1332_v50, %v1331_v45  ;;  %v3219_v53 = vpack.c.bf16 %v1333_v52, %v1332_v50  ;;  %v3092_v60 = vld [vmem:[%s4491_s10] ss:$0 sm:$0xff]  ;;  %v3782_v44 = vld [vmem:[%s4484_s3 + $0x30] sm:$0xff]  }
 0x111   : > { %3381 = vmatmul.mubr.msk.bf16.gmra.mrb[4].mxu1 %vm467_vm0, %v3196_v2  ;;  %v3093_v62 = vld [vmem:[%s4492_s11] ss:$0 sm:$0xff] }
 0x112   : > { %3386 = vmatprep.mubr.msk.bf16.mxu1 %vm467_vm0, %v3197_v4 }
 0x119   : > { %3387 = vmatmul.mubr.msk.bf16.vlgmr.msra.gmra.mrb[0].mxu1 %vm467_vm0, %v3198_v5 }
 0x11a   : > { %3395 = vmatpush3.bf16.msra.mxu1 %v3773_v59  ;;  %3390 = vmatprep.mubr.msk.bf16.mxu1 %vm467_vm0, %v3199_v7  ;;  %v3581_v59 = vpack.c.bf16 %v2673_v56, %v2672_v55 }
 0x11b   : > { %3404 = vmatprep.subr.bf16.mxu1 %v3774_v6 }
 0x121   : > { %3391 = vmatmul.mubr.msk.bf16.gmra.mrb[4].mxu1 %vm467_vm0, %v3200_v8 }
 0x122   : > { %3396 = vmatprep.mubr.msk.bf16.mxu1 %vm467_vm0, %v3198_v5 }
 0x129   : > { %3397 = vmatmul.mubr.msk.bf16.vlgmr.msra.gmra.mrb[0].mxu1 %vm467_vm0, %v3199_v7 }
 0x12a   : > { %3405 = vmatpush3.bf16.msra.mxu1 %v3774_v6  ;;  %3400 = vmatprep.mubr.msk.bf16.mxu1 %vm467_vm0, %v3200_v8 }
 0x12b   : > { %3414 = vmatprep.subr.bf16.mxu1 %v3775_v9 }
 0x131   : > { %3401 = vmatmul.mubr.msk.bf16.gmra.mrb[4].mxu1 %vm467_vm0, %v3201_v13 }
 0x132   : > { %3406 = vmatprep.mubr.msk.bf16.mxu1 %vm467_vm0, %v3202_v14 }
 0x139   : > { %3407 = vmatmul.mubr.msk.bf16.vlgmr.msra.gmra.mrb[0].mxu1 %vm467_vm0, %v3203_v18 }
 0x13a   : > { %3415 = vmatpush3.bf16.msra.mxu1 %v3775_v9  ;;  %3410 = vmatprep.mubr.msk.bf16.mxu1 %vm467_vm0, %v3204_v21 }
 0x13b   : > { %3424 = vmatprep.subr.bf16.mxu1 %v3776_v20 }
 0x141   : > { %3411 = vmatmul.mubr.msk.bf16.gmra.mrb[4].mxu1 %vm467_vm0, %v3205_v24 }
 0x142   : > { %3416 = vmatprep.mubr.msk.bf16.mxu1 %vm467_vm0, %v3206_v25 }
 0x149   : > { %3417 = vmatmul.mubr.msk.bf16.vlgmr.msra.gmra.mrb[0].mxu1 %vm467_vm0, %v3207_v26 }
 0x14a   : > { %3425 = vmatpush3.bf16.msra.mxu1 %v3776_v20  ;;  %3420 = vmatprep.mubr.msk.bf16.mxu1 %vm467_vm0, %v3208_v28 }
 0x14b   : > { %3434 = vmatprep.subr.bf16.mxu1 %v3777_v27 }
 0x151   : > { %3421 = vmatmul.mubr.msk.bf16.gmra.mrb[4].mxu1 %vm467_vm0, %v3209_v30 }
 0x152   : > { %3426 = vmatprep.mubr.msk.bf16.mxu1 %vm467_vm0, %v3203_v18 }
 0x159   : > { %3427 = vmatmul.mubr.msk.bf16.vlgmr.msra.gmra.mrb[0].mxu1 %vm467_vm0, %v3204_v21 }
 0x15a   : > { %3435 = vmatpush3.bf16.msra.mxu1 %v3777_v27  ;;  %3430 = vmatprep.mubr.msk.bf16.mxu1 %vm467_vm0, %v3205_v24 }
 0x15b   : > { %3444 = vmatprep.subr.bf16.mxu1 %v3778_v31 }
 0x161   : > { %3431 = vmatmul.mubr.msk.bf16.gmra.mrb[4].mxu1 %vm467_vm0, %v3210_v35 }
 0x162   : > { %3436 = vmatprep.mubr.msk.bf16.mxu1 %vm467_vm0, %v3211_v36 }
 0x169   : > { %3437 = vmatmul.mubr.msk.bf16.vlgmr.msra.gmra.mrb[0].mxu1 %vm467_vm0, %v3212_v40 }
 0x16a   : > { %3445 = vmatpush3.bf16.msra.mxu1 %v3778_v31  ;;  %3440 = vmatprep.mubr.msk.bf16.mxu1 %vm467_vm0, %v3213_v43 }
 0x16b   : > { %3454 = vmatprep.subr.bf16.mxu1 %v3779_v42 }
 0x171   : > { %3441 = vmatmul.mubr.msk.bf16.gmra.mrb[4].mxu1 %vm467_vm0, %v3214_v46 }
 0x172   : > { %3446 = vmatprep.mubr.msk.bf16.mxu1 %vm467_vm0, %v3215_v47 }
 0x179   : > { %3447 = vmatmul.mubr.msk.bf16.vlgmr.msra.gmra.mrb[0].mxu1 %vm467_vm0, %v3216_v48 }
 0x17a   : > { %3455 = vmatpush3.bf16.msra.mxu1 %v3779_v42  ;;  %3450 = vmatprep.mubr.msk.bf16.mxu1 %vm467_vm0, %v3217_v49 }
 0x17b   : > { %3580 = vmatprep.subr.bf16.mxu1 %v3858_v58 }
 0x181   : > { %3451 = vmatmul.mubr.msk.bf16.gmra.mrb[4].mxu1 %vm467_vm0, %v3218_v51  ;;  %v1693_v51 = vld [vmem:[#allocation3 + $0x7] sm:$0xff] }
 0x182   : > { %3456 = vmatprep.mubr.msk.bf16.mxu1 %vm467_vm0, %v3212_v40 }
 0x189   : > { %3457 = vmatmul.mubr.msk.bf16.vlgmr.msra.gmra.mrb[0].mxu1 %vm467_vm0, %v3213_v43 }
 0x18a   : > { %3460 = vmatprep.mubr.msk.bf16.mxu1 %vm467_vm0, %v3214_v46  ;;  %3582 = vmatpush3.bf16.msra.mxu1 %v3581_v59 }
 0x18b   : > { %3583 = vmatprep.subr.bf16.mxu1 %v3858_v58 }
 0x191   : > { %3461 = vmatmul.mubr.msk.bf16.gmra.mrb[4].mxu1 %vm467_vm0, %v3219_v53 }
 0x192   : > { %3558 = vmatprep.mubr.msk.f32.mxu1 %vm3859_vm2, %v3857_v3 }
 0x25c   : > { %v3458_v61 = vpop.f32.mrb[0].mxu1 }
 0x25d   : > { %v1655_v63 = vmul.f32 %v3458_v61, %v3092_v60  ;;  %v1607_v0 = vpop.f32.mrb[1].mxu1 }
 0x25e   : > { %v1653_v1 = vmul.f32 %v3092_v60, %v1607_v0  ;;  %v3459_v2 = vpop.f32.mrb[2].mxu1 }
 0x25f   : > { %v1670_v4 = vadd.f32 %v3093_v62, %v1655_v63  ;;  %v1656_v5 = vmul.f32 %v3459_v2, %v3092_v60  ;;  %v1610_v6 = vpop.f32.mrb[3].mxu1 }
 0x260   : > { %v1668_v7 = vadd.f32 %v3093_v62, %v1653_v1  ;;  %v1654_v8 = vmul.f32 %v3092_v60, %v1610_v6 }
 0x261   : > { %v1678_v9 = vmax.f32 %v1670_v4, 0.0  ;;  %v1671_v10 = vadd.f32 %v3093_v62, %v1656_v5 }
 0x262   : > { %v1676_v11 = vmax.f32 %v1668_v7, 0.0  ;;  %v1669_v12 = vadd.f32 %v3093_v62, %v1654_v8 }
 0x263   : > { %1687 = vst.msk [vmem:[#allocation3 + $0x50] sm:$0xff] %vm467_vm0, %v1678_v9  ;;  %v1679_v13 = vmax.f32 %v1671_v10, 0.0  ;;  %v3783_v10 = vld [vmem:[%s4484_s3 + $0x8] sm:$0xff]  }
 0x264   : > { %1685 = vst.msk [vmem:[#allocation3 + $0x20] sm:$0xff] %vm467_vm0, %v1676_v11  ;;  %v1677_v14 = vmax.f32 %v1669_v12, 0.0  ;;  %v3462_v15 = vpop.f32.mrb[4].mxu1 }
 0x265   : > { %1688 = vst.msk [vmem:[#allocation3 + $0x68] sm:$0xff] %vm467_vm0, %v1679_v13  ;;  %v1659_v16 = vmul.f32 %v3462_v15, %v3092_v60  ;;  %v1623_v17 = vpop.f32.mrb[5].mxu1  ;;  %v2749_v15 = vld [vmem:[%s4487_s6] sm:$0xff] }
 0x266   : > { %1686 = vst.msk [vmem:[#allocation3 + $0x38] sm:$0xff] %vm467_vm0, %v1677_v14  ;;  %v1657_v18 = vmul.f32 %v3092_v60, %v1623_v17  ;;  %v3463_v19 = vpop.f32.mrb[6].mxu1 }
 0x267   : > { %v1674_v20 = vadd.f32 %v3093_v62, %v1659_v16  ;;  %v1660_v21 = vmul.f32 %v3463_v19, %v3092_v60  ;;  %v1626_v22 = vpop.f32.mrb[7].mxu1  ;;  %v2750_v16 = vld [vmem:[%s4487_s6 + $0x8] sm:$0xff] }
 0x268   : > { %v1672_v23 = vadd.f32 %v3093_v62, %v1657_v18  ;;  %v1658_v24 = vmul.f32 %v3092_v60, %v1626_v22  ;;  %v3584_v19 = vpack.c.bf16 %v2750_v16, %v2749_v15  ;;  %v2752_v22 = vld [vmem:[%s4487_s6 + $0x18] sm:$0xff]  ;;  %v2757_v16 = vld [vmem:[%s4488_s7] sm:$0x1] }
 0x269   : > { %v1682_v25 = vmax.f32 %v1674_v20, 0.0  ;;  %v1675_v26 = vadd.f32 %v3093_v62, %v1660_v21  ;;  %v2751_v21 = vld [vmem:[%s4487_s6 + $0x10] sm:$0xff] }
 0x26a   : > { %v1680_v27 = vmax.f32 %v1672_v23, 0.0  ;;  %v1673_v28 = vadd.f32 %v3093_v62, %v1658_v24  ;;  %v4255_v33 = vld [vmem:[#allocation3 + $0x50] sm:$0xff]  ;;  %v3587_v23 = vpack.c.bf16 %v2752_v22, %v2751_v21 }
 0x26b   : > { %1691 = vst.msk [vmem:[#allocation3 + $0xb0] sm:$0xff] %vm467_vm0, %v1682_v25  ;;  %v1683_v29 = vmax.f32 %v1675_v26, 0.0  ;;  %v4252_v30 = vld [vmem:[#allocation3 + $0x20] sm:$0xff]  ;;  %v1696_v37 = vld [vmem:[#allocation3 + $0x4f] sm:$0xff]  ;;  %v2653_v45 = vsel %vm467_vm0, %v4255_v33, 0.0  ;;  %v2754_v25 = vld [vmem:[%s4487_s6 + $0x28] sm:$0xff] }
 0x26c   : > { %1689 = vst.msk [vmem:[#allocation3 + $0x80] sm:$0xff] %vm467_vm0, %v1680_v27  ;;  %v1681_v31 = vmax.f32 %v1673_v28, 0.0  ;;  %v1697_v32 = vld [vmem:[#allocation3 + $0x67] sm:$0xff]  ;;  %v1694_v34 = vld [vmem:[#allocation3 + $0x1f] sm:$0xff]  ;;  %v2650_v39 = vsel %vm467_vm0, %v4252_v30, 0.0  ;;  %v2753_v24 = vld [vmem:[%s4487_s6 + $0x20] sm:$0xff] }
 0x26d   : > { %1692 = vst.msk [vmem:[#allocation3 + $0xc8] sm:$0xff] %vm467_vm0, %v1683_v29  ;;  %v1695_v35 = vld [vmem:[#allocation3 + $0x37] sm:$0xff]  ;;  %v3221_v41 = vpack.c.bf16 %v1697_v32, %v1696_v37  ;;  %v4265_v42 = vld [vmem:[#allocation3 + $0x68] sm:$0xff]  ;;  %v3224_v1 = vpack.c.bf16 %v1694_v34, %v1693_v51  ;;  %v3590_v27 = vpack.c.bf16 %v2754_v25, %v2753_v24 }
 0x26e   : > { %v4258_v36 = vld [vmem:[#allocation3 + $0x38] sm:$0xff]  ;;  %1690 = vst.msk [vmem:[#allocation3 + $0x98] sm:$0xff] %vm467_vm0, %v1681_v31  ;;  %v3220_v38 = vpack.c.bf16 %v1695_v35, %v1694_v34  ;;  %v2655_v47 = vsel %vm467_vm0, %v4265_v42, 0.0  ;;  %v3225_v8 = vpack.c.bf16 %v1696_v37, %v1695_v35  ;;  %v3784_v26 = vld [vmem:[%s4484_s3 + $0x20] sm:$0xff]   ;;  %v1998_v28 = vld [vmem:[#allocation3 + $0x8] sm:$0xff] }
 0x26f   : > { %v2651_v40 = vsel %vm467_vm0, %v4258_v36, 0.0  ;;  %v3229_v31 = vpack.c.bf16 %v4252_v30, %v1998_v28  ;;  %v3785_v34 = vld [vmem:[%s4484_s3 + $0x38] sm:$0xff]   ;;  %v3233_v37 = vpack.c.bf16 %v4258_v36, %v4252_v30 }
 0x270   : > { %v2652_v43 = vadd.f32 %v2651_v40, %v2650_v39  ;;  %3466 = vmatprep.mubr.msk.bf16.mxu0 %vm467_vm0, %v3220_v38  ;;  %v3234_v38 = vpack.c.bf16 %v4265_v42, %v4255_v33  ;;  %v3786_v39 = vld [vmem:[%s4484_s3 + $0x10] sm:$0xff]  }
 0x271   : > { %3467 = vmatmul.mubr.msk.bf16.vlgmr.msra.gmra.mrb[8].mxu0 %vm467_vm0, %v3221_v41  ;;  %v2320_v41 = vld [vmem:[#allocation3 + $0x9] sm:$0xff] }
 0x272   : > { %v2654_v46 = vadd.f32 %v2653_v45, %v2652_v43  ;;  %3475 = vmatpush3.bf16.msra.mxu0 %v4234_v57  ;;  %v4281_v52 = vld [vmem:[#allocation3 + $0xb0] sm:$0xff]  ;;  %v2322_v45 = vld [vmem:[#allocation3 + $0x39] sm:$0xff] }
 0x273   : > { %v4277_v48 = vld [vmem:[#allocation3 + $0x80] sm:$0xff]  ;;  %3484 = vmatprep.subr.bf16.mxu0 %v3782_v44  ;;  %v1700_v60 = vld [vmem:[#allocation3 + $0xaf] sm:$0xff]  ;;  %v2661_v2 = vsel %vm467_vm0, %v4281_v52, 0.0 }
 0x274   : > { %v2656_v49 = vadd.f32 %v2655_v47, %v2654_v46  ;;  %v4279_v50 = vld [vmem:[#allocation3 + $0xc7] sm:$0xff]  ;;  %v2657_v53 = vsel %vm467_vm0, %v4277_v48, 0.0  ;;  %v1698_v54 = vld [vmem:[#allocation3 + $0x7f] sm:$0xff]  ;;  %v3231_v35 = vpack.c.bf16 %v4277_v48, %v4265_v42  ;;  %v2323_v47 = vld [vmem:[#allocation3 + $0x51] sm:$0xff] }
 0x275   : > { %v1699_v55 = vld [vmem:[#allocation3 + $0x97] sm:$0xff]  ;;  %v3223_v62 = vpack.c.bf16 %v4279_v50, %v1700_v60  ;;  %v4290_v63 = vld [vmem:[#allocation3 + $0xc8] sm:$0xff]  ;;  %v3226_v11 = vpack.c.bf16 %v1698_v54, %v1697_v32  ;;  %v3230_v32 = vpack.c.bf16 %v4255_v33, %v4258_v36  ;;  %v2007_v36 = vld [vmem:[#allocation3 + $0xe0] sm:$0xff] }
 0x276   : > { %v4285_v56 = vld [vmem:[#allocation3 + $0x98] sm:$0xff]  ;;  %v2658_v57 = vadd.f32 %v2657_v53, %v2656_v49  ;;  %v3222_v59 = vpack.c.bf16 %v1699_v55, %v1698_v54  ;;  %v2663_v5 = vsel %vm467_vm0, %v4290_v63, 0.0  ;;  %v3227_v17 = vpack.c.bf16 %v1700_v60, %v1699_v55  ;;  %v2321_v42 = vld [vmem:[#allocation3 + $0x21] sm:$0xff]  ;;  %v2324_v49 = vld [vmem:[#allocation3 + $0x69] sm:$0xff] }
 0x277   : > { %v2659_v61 = vsel %vm467_vm0, %v4285_v56, 0.0  ;;  %v3235_v40 = vpack.c.bf16 %v4285_v56, %v4277_v48  ;;  %v3236_v30 = vpack.c.bf16 %v4290_v63, %v4281_v52  ;;  %v3787_v33 = vld [vmem:[%s4484_s3 + $0x28] sm:$0xff]   ;;  %v3237_v43 = vpack.c.bf16 %v2007_v36, %v4290_v63  ;;  %v2325_v46 = vld [vmem:[#allocation3 + $0x81] sm:$0xff]  ;;  %v2879_v36 = vld [vmem:[%s4005_s15] sm:$0xff] }
 0x278   : > { %v2660_v0 = vadd.f32 %v2659_v61, %v2658_v57  ;;  %3470 = vmatprep.mubr.msk.bf16.mxu0 %vm467_vm0, %v3222_v59  ;;  %v3239_v48 = vpack.c.bf16 %v2323_v47, %v2322_v45  ;;  %v3240_v51 = vpack.c.bf16 %v2325_v46, %v2324_v49  ;;  %v2327_v53 = vld [vmem:[#allocation3 + $0xb1] sm:$0xff]  ;;  %v3242_v55 = vpack.c.bf16 %v2322_v45, %v2321_v42  ;;  %v2755_v59 = vld [vmem:[%s4487_s6 + $0x30] sm:$0xff]  ;;  %v2756_v60 = vld [vmem:[%s4487_s6 + $0x38] sm:$0xff] }
 0x279   : > { %3471 = vmatmul.mubr.msk.bf16.gmra.mrb[12].mxu0 %vm467_vm0, %v3223_v62  ;;  %v3593_v61 = vpack.c.bf16 %v2756_v60, %v2755_v59  ;;  %v2328_v62 = vld [vmem:[#allocation3 + $0xc9] sm:$0xff] }
 0x27a   : > { %v2662_v4 = vadd.f32 %v2661_v2, %v2660_v0  ;;  %3476 = vmatprep.mubr.msk.bf16.mxu0 %vm467_vm0, %v3224_v1  ;;  %v3245_v63 = vpack.c.bf16 %v2328_v62, %v2327_v53  ;;  %v2329_v0 = vld [vmem:[#allocation3 + $0xe1] sm:$0xff]  ;;  %v2674_v2 = vld [vmem:[%s4486_s5] sm:$0x1] }
 0x27b   : > { %v3246_v1 = vpack.c.bf16 %v2329_v0, %v2328_v62 }
 0x27c   : > { %v2664_v6 = vadd.f32 %v2663_v5, %v2662_v4 }
 0x27e   : > { %v2665_v7 = vrot.slane %v2664_v6, 4 }
 0x280   : > { %v2666_v9 = vadd.f32 %v2665_v7, %v2664_v6 }
 0x281   : > { %3477 = vmatmul.mubr.msk.bf16.vlgmr.msra.gmra.mrb[8].mxu0 %vm467_vm0, %v3225_v8 }
 0x282   : > { %v2667_v12 = vrot.slane %v2666_v9, 2  ;;  %3480 = vmatprep.mubr.msk.bf16.mxu0 %vm467_vm0, %v3226_v11  ;;  %3485 = vmatpush3.bf16.msra.mxu0 %v3782_v44  ;;  %v3238_v44 = vpack.c.bf16 %v2321_v42, %v2320_v41  ;;  %v2880_v41 = vld [vmem:[%s4005_s15 + $0x8] sm:$0xff] }
 0x283   : > { %3494 = vmatprep.subr.bf16.mxu0 %v3783_v10 }
 0x284   : > { %v2668_v13 = vadd.f32 %v2667_v12, %v2666_v9 }
 0x286   : > { %v2669_v14 = vrot.slane %v2668_v13, 1 }
 0x288   : > { %v2670_v18 = vadd.f32 %v2669_v14, %v2668_v13 }
 0x289   : > { %3481 = vmatmul.mubr.msk.bf16.gmra.mrb[12].mxu0 %vm467_vm0, %v3227_v17 }
 0x28a   : > { %v2671_v20 = vmul.f32 0.015625, %v2670_v18  ;;  %3486 = vmatprep.mubr.msk.bf16.mxu0 %vm467_vm0, %v3225_v8 }
 0x28c   : > { %3559 = vmatmul.mubr.msk.f32.vlgmr.msra.gmra.mrb[8].mxu1 %vm467_vm0, %v2671_v20 }
 0x28d   : > { %3585 = vmatpush3.bf16.msra.mxu1 %v3584_v19  ;;  %3577 = vmatprep.mubr.msk.f32.mxu1 %vm3859_vm2, %v3857_v3  ;;  %v1702_v3 = vld [vmem:[#allocation3 + $0xdf] sm:$0xff] }
 0x28e   : > { %3586 = vmatprep.subr.bf16.mxu1 %v3858_v58  ;;  %v3228_v29 = vpack.c.bf16 %v1702_v3, %v4279_v50  ;;  %v3788_v50 = vld [vmem:[%s4484_s3 + $0x40] sm:$0xff]  }
 0x28f   : > { %v3185_v3 = vld [vmem:[%s4493_s12] ss:$0 sm:$0xff] }
 0x291   : > { %3588 = vmatpush3.bf16.msra.mxu1 %v3587_v23  ;;  %3487 = vmatmul.mubr.msk.bf16.vlgmr.msra.gmra.mrb[8].mxu0 %vm467_vm0, %v3226_v11  ;;  %v2837_v23 = vlaneseq }
 0x292   : > { %3589 = vmatprep.subr.bf16.mxu1 %v3858_v58  ;;  %3490 = vmatprep.mubr.msk.bf16.mxu0 %vm467_vm0, %v3227_v17 }
 0x293   : > { %3495 = vmatpush3.bf16.msra.mxu0 %v3783_v10  ;;  %v2838_v24 = vshrl.u32 %v2837_v23, 7 }
 0x294   : > { %3504 = vmatprep.subr.bf16.mxu0 %v3784_v26 }
 0x295   : > { %3591 = vmatpush3.bf16.msra.mxu1 %v3590_v27  ;;  %v2839_v25 = vsub.s32 0, %v2838_v24 }
 0x296   : > { %3592 = vmatprep.subr.bf16.mxu1 %v3858_v58  ;;  %v3232_v58 = vpack.c.bf16 %v4281_v52, %v4285_v56  ;;  %v2326_v52 = vld [vmem:[#allocation3 + $0x99] sm:$0xff]  ;;  %v3243_v56 = vpack.c.bf16 %v2324_v49, %v2323_v47  ;;  %v2882_v47 = vld [vmem:[%s4005_s15 + $0x18] sm:$0xff] }
 0x297   : > { %v3241_v54 = vpack.c.bf16 %v2327_v53, %v2326_v52  ;;  %v3244_v57 = vpack.c.bf16 %v2326_v52, %v2325_v46  ;;  %v2881_v46 = vld [vmem:[%s4005_s15 + $0x10] sm:$0xff]  ;;  %v2884_v53 = vld [vmem:[%s4005_s15 + $0x28] sm:$0xff] }
 0x299   : > { %3491 = vmatmul.mubr.msk.bf16.gmra.mrb[12].mxu0 %vm467_vm0, %v3228_v29  ;;  %3594 = vmatpush3.bf16.msra.mxu1 %v3593_v61 }
 0x29a   : > { %3496 = vmatprep.mubr.msk.bf16.mxu0 %vm467_vm0, %v3229_v31 }
 0x2a1   : > { %3497 = vmatmul.mubr.msk.bf16.vlgmr.msra.gmra.mrb[8].mxu0 %vm467_vm0, %v3230_v32 }
 0x2a2   : > { %3500 = vmatprep.mubr.msk.bf16.mxu0 %vm467_vm0, %v3231_v35  ;;  %3505 = vmatpush3.bf16.msra.mxu0 %v3784_v26 }
 0x2a3   : > { %3514 = vmatprep.subr.bf16.mxu0 %v3785_v34 }
 0x2a9   : > { %3501 = vmatmul.mubr.msk.bf16.gmra.mrb[12].mxu0 %vm467_vm0, %v3232_v58 }
 0x2aa   : > { %3506 = vmatprep.mubr.msk.bf16.mxu0 %vm467_vm0, %v3233_v37 }
 0x2b1   : > { %3507 = vmatmul.mubr.msk.bf16.vlgmr.msra.gmra.mrb[8].mxu0 %vm467_vm0, %v3234_v38  ;;  %v3186_v38 = vld [vmem:[%s4494_s13] ss:$0 sm:$0xff] }
 0x2b2   : > { %3510 = vmatprep.mubr.msk.bf16.mxu0 %vm467_vm0, %v3235_v40  ;;  %3515 = vmatpush3.bf16.msra.mxu0 %v3785_v34 }
 0x2b3   : > { %3524 = vmatprep.subr.bf16.mxu0 %v3786_v39 }
 0x2b9   : > { %3511 = vmatmul.mubr.msk.bf16.gmra.mrb[12].mxu0 %vm467_vm0, %v3236_v30 }
 0x2ba   : > { %3516 = vmatprep.mubr.msk.bf16.mxu0 %vm467_vm0, %v3230_v32 }
 0x2c1   : > { %3517 = vmatmul.mubr.msk.bf16.vlgmr.msra.gmra.mrb[8].mxu0 %vm467_vm0, %v3231_v35 }
 0x2c2   : > { %3520 = vmatprep.mubr.msk.bf16.mxu0 %vm467_vm0, %v3232_v58  ;;  %3525 = vmatpush3.bf16.msra.mxu0 %v3786_v39 }
 0x2c3   : > { %3534 = vmatprep.subr.bf16.mxu0 %v3787_v33 }
 0x2c9   : > { %3521 = vmatmul.mubr.msk.bf16.gmra.mrb[12].mxu0 %vm467_vm0, %v3237_v43 }
 0x2ca   : > { %3526 = vmatprep.mubr.msk.bf16.mxu0 %vm467_vm0, %v3238_v44 }
 0x2d1   : > { %3527 = vmatmul.mubr.msk.bf16.vlgmr.msra.gmra.mrb[8].mxu0 %vm467_vm0, %v3239_v48 }
 0x2d2   : > { %3530 = vmatprep.mubr.msk.bf16.mxu0 %vm467_vm0, %v3240_v51  ;;  %3535 = vmatpush3.bf16.msra.mxu0 %v3787_v33 }
 0x2d3   : > { %3544 = vmatprep.subr.bf16.mxu0 %v3788_v50 }
 0x2d9   : > { %3531 = vmatmul.mubr.msk.bf16.gmra.mrb[12].mxu0 %vm467_vm0, %v3241_v54 }
 0x2da   : > { %3536 = vmatprep.mubr.msk.bf16.mxu0 %vm467_vm0, %v3242_v55  ;;  %v2886_v55 = vld [vmem:[%s4005_s15 + $0x38] sm:$0xff] }
 0x2e1   : > { %3537 = vmatmul.mubr.msk.bf16.vlgmr.msra.gmra.mrb[8].mxu0 %vm467_vm0, %v3243_v56 }
 0x2e2   : > { %3540 = vmatprep.mubr.msk.bf16.mxu0 %vm467_vm0, %v3244_v57  ;;  %3545 = vmatpush3.bf16.msra.mxu0 %v3788_v50 }
 0x2e9   : > { %3541 = vmatmul.mubr.msk.bf16.gmra.mrb[12].mxu0 %vm467_vm0, %v3245_v63 }
 0x2ea   : > { %3546 = vmatprep.mubr.msk.bf16.mxu0 %vm467_vm0, %v3239_v48  ;;  %v2883_v48 = vld [vmem:[%s4005_s15 + $0x20] sm:$0xff] }
 0x2f1   : > { %3547 = vmatmul.mubr.msk.bf16.vlgmr.msra.gmra.mrb[8].mxu0 %vm467_vm0, %v3240_v51 }
 0x2f2   : > { %3550 = vmatprep.mubr.msk.bf16.mxu0 %vm467_vm0, %v3241_v54  ;;  %v2885_v54 = vld [vmem:[%s4005_s15 + $0x30] sm:$0xff]  ;;  %s3799_s15 = scalar_lea.vmem %s3798_s20, 2048 }
 0x2f3   : > { %p3801_p1 = scmp.lt.s32.totalorder %s3799_s15, %s3793_s27 }
 0x2f5   : > { %p3802_p2 = por %p3801_p1, %p3800_p0 }
 0x2f7   : > { %p3803_p3 = pnand %p3802_p2, %p3796_p13 }
 0x2f9   : > { %3551 = vmatmul.mubr.msk.bf16.gmra.mrb[12].mxu0 %vm467_vm0, %v3246_v1 }
 0x35f   : > { %v2744_v4 = vpop.f32.mrb[8].mxu1 }
 0x360   : > { %v2745_v5 = vadd.f32 %v2744_v4, %v2674_v2  ;;  %v3560_v6 = vpop.f32.mrb[9].mxu1 }
 0x362   : > { %v2748_v7 = vmax.f32 %v2745_v5, 0.0 }
 0x364   : > { %3578 = vmatmul.mubr.msk.f32.vlgmr.msra.gmra.mrb[10].mxu1 %vm572_vm1, %v2748_v7 }
 0x3c4   : > { %v3548_v8 = vpop.f32.mrb[8].mxu0 }
 0x3c5   : > { %v2603_v9 = vpop.f32.mrb[9].mxu0 }
 0x3c6   : > { %v3549_v10 = vpop.f32.mrb[10].mxu0 }
 0x3c7   : > { %v2606_v11 = vpop.f32.mrb[11].mxu0 }
 0x3cc   : > { %v3552_v12 = vpop.f32.mrb[12].mxu0 }
 0x3cd   : > { %v2619_v13 = vpop.f32.mrb[13].mxu0 }
 0x3ce   : > { %v3553_v14 = vpop.f32.mrb[14].mxu0 }
 0x3cf   : > { %v2622_v15 = vpop.f32.mrb[15].mxu0 }
 0x437   : > { %v2827_v17 = vpop.f32.mrb[10].mxu1 }
 0x438   : > { %v2828_v18 = vadd.f32 %v2827_v17, %v2757_v16  ;;  %v3579_v19 = vpop.f32.mrb[11].mxu1 }
 0x43a   : > { %v3184_v20 = vmul.f32 -1.442695, %v2828_v18 }
 0x43c   : > { %3789 = vpow2.f32 %v3184_v20 }
 0x446   : > { %v3790_v21 = vpop.eup %3789 }
 0x447   : > { %v2834_v22 = vadd.f32 1.0, %v3790_v21 }
 0x449   : > { %3791 = vrcp.f32 %v2834_v22 }
 0x453   : > { %v3792_v26 = vpop.eup %3791 }
 0x454   : > { %v2840_v27 = vrot.slane %v3792_v26, %v2839_v25 }
 0x456   : > { %v2841_v28 = vmul.f32 %v2840_v27, %v2603_v9  ;;  %v2842_v29 = vmul.f32 %v2840_v27, %v2606_v11  ;;  %v2843_v31 = vmul.f32 %v3548_v8, %v2840_v27  ;;  %v2844_v32 = vmul.f32 %v3549_v10, %v2840_v27 }
 0x457   : > { %v2845_v34 = vmul.f32 %v2840_v27, %v2619_v13  ;;  %v2846_v35 = vmul.f32 %v2840_v27, %v2622_v15  ;;  %v2847_v58 = vmul.f32 %v3552_v12, %v2840_v27  ;;  %v2848_v37 = vmul.f32 %v3553_v14, %v2840_v27 }
 0x458   : > { %v2856_v39 = vmul.f32 %v3185_v3, %v2841_v28  ;;  %v2857_v40 = vmul.f32 %v3185_v3, %v2842_v29  ;;  %v2858_v30 = vmul.f32 %v3185_v3, %v2843_v31  ;;  %v2859_v33 = vmul.f32 %v3185_v3, %v2844_v32 }
 0x459   : > { %v2860_v42 = vmul.f32 %v3185_v3, %v2845_v34  ;;  %v2861_v43 = vmul.f32 %v3185_v3, %v2846_v35  ;;  %v2862_v44 = vmul.f32 %v3185_v3, %v2847_v58  ;;  %v2863_v45 = vmul.f32 %v3185_v3, %v2848_v37 }
 0x45a   : > { %v2871_v49 = vadd.f32 %v3186_v38, %v2856_v39  ;;  %v2872_v50 = vadd.f32 %v3186_v38, %v2857_v40  ;;  %v2873_v51 = vadd.f32 %v3186_v38, %v2858_v30  ;;  %v2874_v52 = vadd.f32 %v3186_v38, %v2859_v33 }
 0x45b   : > { %v2875_v56 = vadd.f32 %v3186_v38, %v2860_v42  ;;  %v2876_v57 = vadd.f32 %v3186_v38, %v2861_v43  ;;  %v2877_v59 = vadd.f32 %v3186_v38, %v2862_v44  ;;  %v2878_v60 = vadd.f32 %v3186_v38, %v2863_v45 }
 0x45c   : > { %v2887_v61 = vadd.f32 %v2879_v36, %v2871_v49  ;;  %v2888_v62 = vadd.f32 %v2880_v41, %v2872_v50  ;;  %v2889_v63 = vadd.f32 %v2881_v46, %v2873_v51  ;;  %v2890_v0 = vadd.f32 %v2882_v47, %v2874_v52 }
 0x45d   : > { %v2891_v1 = vadd.f32 %v2883_v48, %v2875_v56  ;;  %v2892_v2 = vadd.f32 %v2884_v53, %v2876_v57  ;;  %v2893_v4 = vadd.f32 %v2885_v54, %v2877_v59  ;;  %v2894_v5 = vadd.f32 %v2886_v55, %v2878_v60 }
 0x45e   : > { %v2895_v6 = vmax.f32 %v2887_v61, 0.0  ;;  %v2896_v7 = vmax.f32 %v2888_v62, 0.0  ;;  %v2897_v8 = vmax.f32 %v2889_v63, 0.0  ;;  %v2898_v9 = vmax.f32 %v2890_v0, 0.0 }
 0x45f   : > { %v2899_v10 = vmax.f32 %v2891_v1, 0.0  ;;  %v2900_v11 = vmax.f32 %v2892_v2, 0.0  ;;  %v2901_v12 = vmax.f32 %v2893_v4, 0.0  ;;  %v2902_v13 = vmax.f32 %v2894_v5, 0.0 }
 0x460   : > { %2903 = vst.msk [vmem:[%s460_s21] sm:$0xff] %vm572_vm1, %v2895_v6  ;;  %2904 = vst.msk [vmem:[%s460_s21 + $0x8] sm:$0xff] %vm572_vm1, %v2896_v7 }
 0x461   : > { %2905 = vst.msk [vmem:[%s460_s21 + $0x10] sm:$0xff] %vm572_vm1, %v2897_v8  ;;  %2906 = vst.msk [vmem:[%s460_s21 + $0x18] sm:$0xff] %vm572_vm1, %v2898_v9 }
 0x462   : > { %2907 = vst.msk [vmem:[%s460_s21 + $0x20] sm:$0xff] %vm572_vm1, %v2899_v10  ;;  %2908 = vst.msk [vmem:[%s460_s21 + $0x28] sm:$0xff] %vm572_vm1, %v2900_v11 }
 0x463   : > { %2909 = vst.msk [vmem:[%s460_s21 + $0x30] sm:$0xff] %vm572_vm1, %v2901_v12  ;;  %2910 = vst.msk [vmem:[%s460_s21 + $0x38] sm:$0xff] %vm572_vm1, %v2902_v13 }
 0x464   : > { %3806 = shalt.err (!%p3803_p3)
}
 0x465   : > { %s3807_s25 = scalar_lea.hbm %s4426_s28, 1024  ;;  %s3811_s18 = scalar_lea.hbm %s4495_s14, 2048 }
 0x466   : > { %p3808_p4 = scmp.ne.s32.totalorder %s4426_s28, %s3807_s25  ;;  %p3812_p9 = scmp.lt.u32.totalorder %s4426_s28, %s4495_s14 }
 0x467   : > { %p3813_p10 = scmp.lt.u32.totalorder %s3811_s18, %s3807_s25  ;;  %p3815_p12 = scmp.lt.u32.totalorder %s3807_s25, %s4426_s28 }
 0x468   : > { %p3809_p7 = pnand %p3808_p4, %p3976_p5 }
 0x469   : > { %p3814_p11 = por %p3813_p10, %p3812_p9 }
 0x46a   : > { %p3810_p8 = pneg %p3809_p7 }
 0x46b   : > { %p3816_p13 = por %p3815_p12, %p3814_p11 }
 0x46d   : > { %p3817_p0 = pnand %p3816_p13, %p3810_p8 }
 0x46f   : > { %3820 = shalt.err (!%p3817_p0)
}
 0x470   : > { %s3861_s27 = smov 128   ;;  %s3862_s15 = smov 8  }
 0x471   : > { %3723 = dma.vmem_to_hbm [thread:$0]  (%p3976_p5), %s4428_s26, 1024, %s4426_s28, %s4440_s17, %s3861_s27, %s3861_s27, %s3862_s15  }
 0x472 PF: > { %p3729_p1 = scmp.ge.s32.totalorder %s3855_s16, 2  ;;  %s2940_s0 = sand.u32 1, %s3843_s29  }
 0x473   : > { %s2941_s25 = scalar_lea.sflag [#allocation5], %s2940_s0 }
 0x474   : > { %p3726_p2 = pnand %p3729_p1, %p3980_p6 }
 0x476   : > { %3838 = dma.done.wait (!%p3726_p2), %s2941_s25, 1024  }
 0x477   : > { %3840 = vsyncadd (!%p3726_p2), %s2941_s25, 4294966272  ;;  %s4503_s21 = sld [smem:[#allocation7_spill]]  ;;  %s4504_s15 = sld [smem:[#allocation8_spill]] }
 0x478   : > { %p24_p3 = scmp.ge.s32.totalorder %s3963_s19, 4   ;;  %s4505_s29 = smov %s3847_s30 }
 0x479   : > { %s4507_s16 = smov %s3963_s19 }
 0x47a   :  { %26 = sbr.rel (!%p24_p3) target bundleno = 5 (0x5), region = 129 }
 0x47d   : > { %s4506_s30 = smov %s4503_s21 }
 0x481   :  { %2946 = vsyncpa [#allocation5], 1 }
 0x482   :  { %2948 = vsyncpa [#allocation5 + $0x1], 1 }

</bundles_post_ra>
